<compile_context>
chip_gen: v6e
topology: v6e:2x2x1
jax: 0.10.0
libtpu: 0.0.40
codegen_flags: <defaults>
</compile_context>

<pallas_src>
import jax
import jax.numpy as jnp
from jax.experimental import pallas as pl
from jax.experimental.pallas import tpu as pltpu


def _pairmodel_kernel(xcat_ref, mask_ref, p0_ref, p1_ref, dis_ref,
                      wih_ref, whh_ref, bg_ref,
                      w1_ref, b1_ref, w2_ref, wnn_ref, bnn_ref,
                      pred_ref,
                      proj_ref, hf_ref, hb_ref):
    B2, T, H = hf_ref.shape
    H2 = 2 * H
    TB2 = T * B2

    def sigmoid(z):
        # sigma(z) == 0.5*(1 + tanh(z/2)): single EUP op, no divide on the recurrent path.
        return 0.5 * jnp.tanh(0.5 * z) + 0.5

    # ---- (1) hoisted input projection for BOTH directions: one dense 128-lane matmul ----
    proj_ref[...] = (jnp.dot(xcat_ref[...], wih_ref[...],
                             preferred_element_type=jnp.float32) + bg_ref[...])

    whh = whh_ref[...]                        # [2H, 8H] block-structured fused recurrent weight

    # ---- (2) fused fwd+bwd LSTM: one fully-unrolled loop, 1 MXU push per step ----
    h = jnp.zeros((B2, H2), jnp.float32)      # lanes [0:H] = fwd hidden, [H:2H] = bwd hidden
    c = jnp.zeros((B2, H2), jnp.float32)
    for i in range(T):                        # T small & static -> full unroll (LLO visibility)
        gates = (proj_ref[pl.ds(i * B2, B2), :]
                 + jnp.dot(h, whh, preferred_element_type=jnp.float32))   # [B2, 8H]
        ig = sigmoid(gates[:, 0:H2])          # fused gate order: [i | f | g | o]
        fg = sigmoid(gates[:, H2:2 * H2])
        gg = jnp.tanh(gates[:, 2 * H2:3 * H2])
        og = sigmoid(gates[:, 3 * H2:4 * H2])
        c = fg * c + ig * gg
        h = og * jnp.tanh(c)
        hf_ref[:, pl.ds(i, 1), :] = h[:, 0:H].reshape(B2, 1, H)            # fwd hidden @ t=i
        hb_ref[:, pl.ds(T - 1 - i, 1), :] = h[:, H:H2].reshape(B2, 1, H)   # bwd hidden @ t=T-1-i

    # ---- (3) attention, batched over all sentences x timesteps ----
    rf = hf_ref[...].reshape(TB2, H)          # row = b*T + t
    rb = hb_ref[...].reshape(TB2, H)
    w1 = w1_ref[...]
    u = jnp.tanh(jnp.dot(rf, w1[0:H, :], preferred_element_type=jnp.float32)
                 + jnp.dot(rb, w1[H:H2, :], preferred_element_type=jnp.float32)
                 + b1_ref[...])                                   # [T*B2, 2H]
    score = jnp.sum(u * w2_ref[...], axis=1, keepdims=True)      # [T*B2, 1]
    # softmax_by_length: exp -> length mask -> normalise by (sum + 1e-9)
    e = jnp.exp(score) * mask_ref[...]                            # [T*B2, 1]
    erf = e * rf
    erb = e * rb
    p0 = p0_ref[...]                          # [B, T*B2] pooling matrix (slot-0 sentences)
    p1 = p1_ref[...]                          # [B, T*B2] pooling matrix (slot-1 sentences)
    inv0 = pl.reciprocal(jnp.dot(p0, e, preferred_element_type=jnp.float32) + 1e-9, approx=True)
    inv1 = pl.reciprocal(jnp.dot(p1, e, preferred_element_type=jnp.float32) + 1e-9, approx=True)
    sf0 = jnp.dot(p0, erf, preferred_element_type=jnp.float32) * inv0    # [B, H]
    sb0 = jnp.dot(p0, erb, preferred_element_type=jnp.float32) * inv0
    sf1 = jnp.dot(p1, erf, preferred_element_type=jnp.float32) * inv1
    sb1 = jnp.dot(p1, erb, preferred_element_type=jnp.float32) * inv1

    # ---- (4) final linear + row softmax, batched over pairs; single dense write ----
    wnn = wnn_ref[...]
    logits = (jnp.dot(sf0, wnn[0:H, :], preferred_element_type=jnp.float32)
              + jnp.dot(sb0, wnn[H:H2, :], preferred_element_type=jnp.float32)
              + jnp.dot(sf1, wnn[H2:H2 + H, :], preferred_element_type=jnp.float32)
              + jnp.dot(sb1, wnn[H2 + H:2 * H2, :], preferred_element_type=jnp.float32)
              + jnp.dot(dis_ref[...], wnn[2 * H2:, :], preferred_element_type=jnp.float32)
              + bnn_ref[...])                                     # [B, C]
    m = jnp.max(logits, axis=1, keepdims=True)
    el = jnp.exp(logits - m)
    pred_ref[...] = el * pl.reciprocal(jnp.sum(el, axis=1, keepdims=True), approx=True)


def _fuse_bilstm_weights(w_ih_f, w_hh_f, b_f, w_ih_b, w_hh_b, b_b, H):
    """Build fused/block-structured BiLSTM weights (plain XLA, outside the kernel).

    Column order of the 8H fused gate axis: [i_f,i_b | f_f,f_b | g_f,g_b | o_f,o_b].
    wih rows [0:D] consume x(t) (forward), rows [D:2D] consume x(T-1-t) (backward).
    whh rows [0:H] consume h_fwd, rows [H:2H] consume h_bwd (block diagonal per direction).
    """
    D = w_ih_f.shape[0]
    wih = jnp.zeros((2 * D, 8 * H), jnp.float32)
    whh = jnp.zeros((2 * H, 8 * H), jnp.float32)
    bg = jnp.zeros((1, 8 * H), jnp.float32)
    for k in range(4):                                  # gate k of (i, f, g, o)
        cf = slice(2 * k * H, (2 * k + 1) * H)          # fused columns, forward half
        cb = slice((2 * k + 1) * H, (2 * k + 2) * H)    # fused columns, backward half
        gk = slice(k * H, (k + 1) * H)                  # gate-k columns of the original weights
        wih = wih.at[0:D, cf].set(w_ih_f[:, gk])
        wih = wih.at[D:2 * D, cb].set(w_ih_b[:, gk])
        whh = whh.at[0:H, cf].set(w_hh_f[:, gk])
        whh = whh.at[H:2 * H, cb].set(w_hh_b[:, gk])
        bg = bg.at[:, cf].set(b_f[:, gk])
        bg = bg.at[:, cb].set(b_b[:, gk])
    return wih, whh, bg


def pairmodel_forward(params, x_ids, sen_len, distance, keep_prob1=1.0, keep_prob2=1.0):
    # TODO(synk): torch.nn.Dropout(1-keep_prob) is stochastic; treated as identity (eval mode).
    del keep_prob1, keep_prob2
    f32 = jnp.float32
    word_emb = params["word_embedding"].astype(f32)
    pos_emb = params["pos_embedding"].astype(f32)
    B, two, T = x_ids.shape
    assert two == 2
    B2 = 2 * B
    D = word_emb.shape[1]
    H = params["w_hh_f"].shape[0]
    C = params["b_nn"].shape[1]
    Dpos = pos_emb.shape[1]

    # ---------- glue: embedding gathers + layout plumbing (plain XLA, outside the kernel) ----------
    # Sentence index b = slot*B + p (slot-major) so the classifier reads contiguous row blocks.
    ids_sm = jnp.transpose(x_ids.astype(jnp.int32), (1, 0, 2)).reshape(B2, T)
    x_sent = jnp.take(word_emb, ids_sm.reshape(-1), axis=0).reshape(B2, T, D)
    x_tmaj = jnp.transpose(x_sent, (1, 0, 2))                    # [T, B2, D]  (time-major)
    # lanes [0:D] = x(t), lanes [D:2D] = x(T-1-t): one dense row block per fused fwd/bwd step
    x_cat = jnp.concatenate([x_tmaj, x_tmaj[::-1]], axis=-1).reshape(T * B2, 2 * D)

    sl_sm = jnp.transpose(sen_len.astype(jnp.int32), (1, 0)).reshape(B2)
    mask_flat = (jnp.arange(T, dtype=jnp.int32)[None, :] < sl_sm[:, None]
                 ).astype(f32).reshape(B2 * T, 1)                # row = b*T + t

    pool = jnp.kron(jnp.eye(B2, dtype=f32), jnp.ones((1, T), f32))   # [B2, B2*T]
    p0 = pool[0:B]                  # time-pooling for slot-0 sentences (pair order)
    p1 = pool[B:B2]                 # slot-1 sentences

    dis = jnp.take(pos_emb, distance.reshape(-1).astype(jnp.int32), axis=0)   # [B, Dpos]

    wih, whh, bg = _fuse_bilstm_weights(
        params["w_ih_f"].astype(f32), params["w_hh_f"].astype(f32), params["b_f"].astype(f32),
        params["w_ih_b"].astype(f32), params["w_hh_b"].astype(f32), params["b_b"].astype(f32), H)

    w1 = params["w_att1"].astype(f32)
    b1 = params["b_att1"].astype(f32)
    w2 = params["w_att2"].astype(f32)
    wnn = params["w_nn"].astype(f32)
    bnn = params["b_nn"].astype(f32)

    inputs = (x_cat, mask_flat, p0, p1, dis, wih, whh, bg, w1, b1, w2, wnn, bnn)

    # advisory cost estimate so XLA schedules the embedding gathers around the custom call
    flops = int(2 * (T * B2) * (2 * D) * (8 * H)          # hoisted input projection
                + 2 * T * B2 * (2 * H) * (8 * H)          # recurrent h @ W_hh over T steps
                + 2 * (T * B2) * (2 * H) * (2 * H)        # attention linear
                + 2 * (T * B2) * (2 * H)                  # attention scores
                + 2 * 6 * B * (T * B2) * H                # attention pooling
                + 2 * B * (4 * H + Dpos) * C)             # classifier
    transcendentals = int(T * B2 * 10 * H + T * B2 * (2 * H + 1) + B * C)
    bytes_accessed = int(sum(int(a.size) * 4 for a in inputs) + B * C * 4)

    vmem = pl.BlockSpec(memory_space=pltpu.MemorySpace.VMEM)
    pred = pl.pallas_call(
        _pairmodel_kernel,
        out_shape=jax.ShapeDtypeStruct((B, C), f32),
        in_specs=[vmem] * len(inputs),
        out_specs=vmem,
        scratch_shapes=[pltpu.VMEM((T * B2, 8 * H), f32),    # hoisted input projection
                        pltpu.VMEM((B2, T, H), f32),         # forward hidden history
                        pltpu.VMEM((B2, T, H), f32)],        # backward hidden history
        cost_estimate=pl.CostEstimate(flops=flops, transcendentals=transcendentals,
                                      bytes_accessed=bytes_accessed),
    )(*inputs)

    # weight-norm regularizer depends only on weights -> plain XLA (kept out of the kernel)
    reg = jnp.sqrt(jnp.sum(wnn * wnn)) + jnp.sqrt(jnp.sum(bnn * bnn))
    return pred, reg


def init_params(key, vocab=50, pos_vocab=20, n_hidden=16, emb_dim_pos=8, n_class=2):
    # opt.n_hidden = 16, opt.embedding_dim = 2*n_hidden (required by the LSTM input_size),
    # opt.embedding_dim_pos = 8, opt.n_class = 2
    H = n_hidden
    emb_dim = 2 * H
    keys = jax.random.split(key, 13)

    def nrm(k, shape, scale=0.1):
        return (scale * jax.random.normal(k, shape)).astype(jnp.float32)

    return {
        "word_embedding": nrm(keys[0], (vocab, emb_dim)),
        "pos_embedding": nrm(keys[1], (pos_vocab, emb_dim_pos)),
        # BiLSTM (forward / backward); bias = b_ih + b_hh folded into one term
        "w_ih_f": nrm(keys[2], (emb_dim, 4 * H)),
        "w_hh_f": nrm(keys[3], (H, 4 * H)),
        "b_f": nrm(keys[4], (1, 4 * H)),
        "w_ih_b": nrm(keys[5], (emb_dim, 4 * H)),
        "w_hh_b": nrm(keys[6], (H, 4 * H)),
        "b_b": nrm(keys[7], (1, 4 * H)),
        # attention linears
        "w_att1": nrm(keys[8], (2 * H, 2 * H)),
        "b_att1": nrm(keys[9], (1, 2 * H)),
        "w_att2": nrm(keys[10], (1, 2 * H)),
        # final classification layer: in = 4*n_hidden + embedding_dim_pos
        "w_nn": nrm(keys[11], (4 * H + emb_dim_pos, n_class)),
        "b_nn": nrm(keys[12], (1, n_class)),
    }


if __name__ == "__main__":
    key = jax.random.PRNGKey(0)
    kp, kx, kd = jax.random.split(key, 3)
    params = init_params(kp)

    B, T = 2, 8                       # batch of pairs, max_sen_len
    x_ids = jax.random.randint(kx, (B, 2, T), 0, 50)         # word ids of the 2 clauses per pair
    sen_len = jnp.array([[8, 5], [3, 8]], dtype=jnp.int32)   # valid lengths per clause
    distance = jax.random.randint(kd, (B,), 0, 20)           # relative-position ids

    pred_pair, reg = pairmodel_forward(params, x_ids, sen_len, distance, 1.0, 1.0)
    jax.block_until_ready((pred_pair, reg))
    assert pred_pair.shape == (B, 2)
    print("KERNEL_OK")
</pallas_src>

<mosaic_0001>
module attributes {stable_mosaic.version = 11 : i64} {
  func.func @_pairmodel_kernel(%arg0: memref<32x64xf32, #tpu.memory_space<vmem>>, %arg1: memref<32x1xf32, #tpu.memory_space<vmem>>, %arg2: memref<2x32xf32, #tpu.memory_space<vmem>>, %arg3: memref<2x32xf32, #tpu.memory_space<vmem>>, %arg4: memref<2x8xf32, #tpu.memory_space<vmem>>, %arg5: memref<64x128xf32, #tpu.memory_space<vmem>>, %arg6: memref<32x128xf32, #tpu.memory_space<vmem>>, %arg7: memref<1x128xf32, #tpu.memory_space<vmem>>, %arg8: memref<32x32xf32, #tpu.memory_space<vmem>>, %arg9: memref<1x32xf32, #tpu.memory_space<vmem>>, %arg10: memref<1x32xf32, #tpu.memory_space<vmem>>, %arg11: memref<72x2xf32, #tpu.memory_space<vmem>>, %arg12: memref<1x2xf32, #tpu.memory_space<vmem>>, %arg13: memref<2x2xf32, #tpu.memory_space<vmem>>, %arg14: memref<32x128xf32, #tpu.memory_space<vmem>>, %arg15: memref<4x8x16xf32, #tpu.memory_space<vmem>>, %arg16: memref<4x8x16xf32, #tpu.memory_space<vmem>>) attributes {dimension_semantics = [], scalar_prefetch = 0 : i64, scratch_operands = 3 : i64, tpu.core_type = #tpu.core_type<tc>} {
    %c0 = arith.constant 0 : index
    %c0_0 = arith.constant 0 : index
    %0 = vector.load %arg0[%c0, %c0_0] : memref<32x64xf32, #tpu.memory_space<vmem>>, vector<32x64xf32>
    %c0_1 = arith.constant 0 : index
    %c0_2 = arith.constant 0 : index
    %1 = vector.load %arg5[%c0_1, %c0_2] : memref<64x128xf32, #tpu.memory_space<vmem>>, vector<64x128xf32>
    %cst = arith.constant dense<0.000000e+00> : vector<32x128xf32>
    %2 = tpu.matmul %0, %1, %cst {dimension_numbers = #tpu.dot_dimension_numbers<[1], [0], [0], [1], [0, 0, 1, 1], [], []>} : vector<32x64xf32>, vector<64x128xf32>, vector<32x128xf32> -> vector<32x128xf32>
    %c0_3 = arith.constant 0 : index
    %c0_4 = arith.constant 0 : index
    %3 = vector.load %arg7[%c0_3, %c0_4] : memref<1x128xf32, #tpu.memory_space<vmem>>, vector<1x128xf32>
    %4 = vector.broadcast %3 : vector<1x128xf32> to vector<32x128xf32>
    %5 = arith.addf %2, %4 : vector<32x128xf32>
    %c0_5 = arith.constant 0 : index
    %c0_6 = arith.constant 0 : index
    %6 = vector.load %arg14[%c0_5, %c0_6] : memref<32x128xf32, #tpu.memory_space<vmem>>, vector<32x128xf32>
    tpu.vector_store %arg14[%c0_5, %c0_6], %5 {strides = array<i32>} : memref<32x128xf32, #tpu.memory_space<vmem>>, vector<32x128xf32>,
    %c0_7 = arith.constant 0 : index
    %c0_8 = arith.constant 0 : index
    %7 = vector.load %arg6[%c0_7, %c0_8] : memref<32x128xf32, #tpu.memory_space<vmem>>, vector<32x128xf32>
    %cst_9 = arith.constant 0.000000e+00 : f32
    %8 = vector.broadcast %cst_9 : f32 to vector<4x32xf32>
    %cst_10 = arith.constant 0.000000e+00 : f32
    %9 = vector.broadcast %cst_10 : f32 to vector<4x32xf32>
    %c0_11 = arith.constant 0 : index
    %c0_12 = arith.constant 0 : index
    %10 = vector.load %arg14[%c0_11, %c0_12] : memref<32x128xf32, #tpu.memory_space<vmem>>, vector<4x128xf32>
    %cst_13 = arith.constant dense<0.000000e+00> : vector<4x128xf32>
    %11 = tpu.matmul %8, %7, %cst_13 {dimension_numbers = #tpu.dot_dimension_numbers<[1], [0], [0], [1], [0, 0, 1, 1], [], []>} : vector<4x32xf32>, vector<32x128xf32>, vector<4x128xf32> -> vector<4x128xf32>
    %12 = arith.addf %10, %11 : vector<4x128xf32>
    %13 = vector.extract_strided_slice %12 {offsets = [0, 0], sizes = [4, 32], strides = [1, 1]} : vector<4x128xf32> to vector<4x32xf32>
    %cst_14 = arith.constant 5.000000e-01 : f32
    %14 = vector.broadcast %cst_14 : f32 to vector<4x32xf32>
    %15 = arith.mulf %14, %13 : vector<4x32xf32>
    %16 = math.tanh %15 : vector<4x32xf32>
    %cst_15 = arith.constant 5.000000e-01 : f32
    %17 = vector.broadcast %cst_15 : f32 to vector<4x32xf32>
    %18 = arith.mulf %17, %16 : vector<4x32xf32>
    %cst_16 = arith.constant 5.000000e-01 : f32
    %19 = vector.broadcast %cst_16 : f32 to vector<4x32xf32>
    %20 = arith.addf %18, %19 : vector<4x32xf32>
    %21 = vector.extract_strided_slice %12 {offsets = [0, 32], sizes = [4, 32], strides = [1, 1]} : vector<4x128xf32> to vector<4x32xf32>
    %cst_17 = arith.constant 5.000000e-01 : f32
    %22 = vector.broadcast %cst_17 : f32 to vector<4x32xf32>
    %23 = arith.mulf %22, %21 : vector<4x32xf32>
    %24 = math.tanh %23 : vector<4x32xf32>
    %cst_18 = arith.constant 5.000000e-01 : f32
    %25 = vector.broadcast %cst_18 : f32 to vector<4x32xf32>
    %26 = arith.mulf %25, %24 : vector<4x32xf32>
    %cst_19 = arith.constant 5.000000e-01 : f32
    %27 = vector.broadcast %cst_19 : f32 to vector<4x32xf32>
    %28 = arith.addf %26, %27 : vector<4x32xf32>
    %29 = vector.extract_strided_slice %12 {offsets = [0, 64], sizes = [4, 32], strides = [1, 1]} : vector<4x128xf32> to vector<4x32xf32>
    %30 = math.tanh %29 : vector<4x32xf32>
    %31 = vector.extract_strided_slice %12 {offsets = [0, 96], sizes = [4, 32], strides = [1, 1]} : vector<4x128xf32> to vector<4x32xf32>
    %cst_20 = arith.constant 5.000000e-01 : f32
    %32 = vector.broadcast %cst_20 : f32 to vector<4x32xf32>
    %33 = arith.mulf %32, %31 : vector<4x32xf32>
    %34 = math.tanh %33 : vector<4x32xf32>
    %cst_21 = arith.constant 5.000000e-01 : f32
    %35 = vector.broadcast %cst_21 : f32 to vector<4x32xf32>
    %36 = arith.mulf %35, %34 : vector<4x32xf32>
    %cst_22 = arith.constant 5.000000e-01 : f32
    %37 = vector.broadcast %cst_22 : f32 to vector<4x32xf32>
    %38 = arith.addf %36, %37 : vector<4x32xf32>
    %39 = arith.mulf %28, %9 : vector<4x32xf32>
    %40 = arith.mulf %20, %30 : vector<4x32xf32>
    %41 = arith.addf %39, %40 : vector<4x32xf32>
    %42 = math.tanh %41 : vector<4x32xf32>
    %43 = arith.mulf %38, %42 : vector<4x32xf32>
    %44 = vector.extract_strided_slice %43 {offsets = [0, 0], sizes = [4, 16], strides = [1, 1]} : vector<4x32xf32> to vector<4x16xf32>
    %45 = vector.shape_cast %44 : vector<4x16xf32> to vector<4x1x16xf32>
    %c0_23 = arith.constant 0 : index
    %c0_24 = arith.constant 0 : index
    %c0_25 = arith.constant 0 : index
    %46 = vector.load %arg15[%c0_23, %c0_24, %c0_25] : memref<4x8x16xf32, #tpu.memory_space<vmem>>, vector<4x1x16xf32>
    tpu.vector_store %arg15[%c0_23, %c0_24, %c0_25], %45 {strides = array<i32>} : memref<4x8x16xf32, #tpu.memory_space<vmem>>, vector<4x1x16xf32>,
    %47 = vector.extract_strided_slice %43 {offsets = [0, 16], sizes = [4, 16], strides = [1, 1]} : vector<4x32xf32> to vector<4x16xf32>
    %48 = vector.shape_cast %47 : vector<4x16xf32> to vector<4x1x16xf32>
    %c0_26 = arith.constant 0 : index
    %c7 = arith.constant 7 : index
    %c0_27 = arith.constant 0 : index
    %49 = vector.load %arg16[%c0_26, %c7, %c0_27] : memref<4x8x16xf32, #tpu.memory_space<vmem>>, vector<4x1x16xf32>
    tpu.vector_store %arg16[%c0_26, %c7, %c0_27], %48 {strides = array<i32>} : memref<4x8x16xf32, #tpu.memory_space<vmem>>, vector<4x1x16xf32>,
    %c4 = arith.constant 4 : index
    %c0_28 = arith.constant 0 : index
    %50 = vector.load %arg14[%c4, %c0_28] : memref<32x128xf32, #tpu.memory_space<vmem>>, vector<4x128xf32>
    %cst_29 = arith.constant dense<0.000000e+00> : vector<4x128xf32>
    %51 = tpu.matmul %43, %7, %cst_29 {dimension_numbers = #tpu.dot_dimension_numbers<[1], [0], [0], [1], [0, 0, 1, 1], [], []>} : vector<4x32xf32>, vector<32x128xf32>, vector<4x128xf32> -> vector<4x128xf32>
    %52 = arith.addf %50, %51 : vector<4x128xf32>
    %53 = vector.extract_strided_slice %52 {offsets = [0, 0], sizes = [4, 32], strides = [1, 1]} : vector<4x128xf32> to vector<4x32xf32>
    %cst_30 = arith.constant 5.000000e-01 : f32
    %54 = vector.broadcast %cst_30 : f32 to vector<4x32xf32>
    %55 = arith.mulf %54, %53 : vector<4x32xf32>
    %56 = math.tanh %55 : vector<4x32xf32>
    %cst_31 = arith.constant 5.000000e-01 : f32
    %57 = vector.broadcast %cst_31 : f32 to vector<4x32xf32>
    %58 = arith.mulf %57, %56 : vector<4x32xf32>
    %cst_32 = arith.constant 5.000000e-01 : f32
    %59 = vector.broadcast %cst_32 : f32 to vector<4x32xf32>
    %60 = arith.addf %58, %59 : vector<4x32xf32>
    %61 = vector.extract_strided_slice %52 {offsets = [0, 32], sizes = [4, 32], strides = [1, 1]} : vector<4x128xf32> to vector<4x32xf32>
    %cst_33 = arith.constant 5.000000e-01 : f32
    %62 = vector.broadcast %cst_33 : f32 to vector<4x32xf32>
    %63 = arith.mulf %62, %61 : vector<4x32xf32>
    %64 = math.tanh %63 : vector<4x32xf32>
    %cst_34 = arith.constant 5.000000e-01 : f32
    %65 = vector.broadcast %cst_34 : f32 to vector<4x32xf32>
    %66 = arith.mulf %65, %64 : vector<4x32xf32>
    %cst_35 = arith.constant 5.000000e-01 : f32
    %67 = vector.broadcast %cst_35 : f32 to vector<4x32xf32>
    %68 = arith.addf %66, %67 : vector<4x32xf32>
    %69 = vector.extract_strided_slice %52 {offsets = [0, 64], sizes = [4, 32], strides = [1, 1]} : vector<4x128xf32> to vector<4x32xf32>
    %70 = math.tanh %69 : vector<4x32xf32>
    %71 = vector.extract_strided_slice %52 {offsets = [0, 96], sizes = [4, 32], strides = [1, 1]} : vector<4x128xf32> to vector<4x32xf32>
    %cst_36 = arith.constant 5.000000e-01 : f32
    %72 = vector.broadcast %cst_36 : f32 to vector<4x32xf32>
    %73 = arith.mulf %72, %71 : vector<4x32xf32>
    %74 = math.tanh %73 : vector<4x32xf32>
    %cst_37 = arith.constant 5.000000e-01 : f32
    %75 = vector.broadcast %cst_37 : f32 to vector<4x32xf32>
    %76 = arith.mulf %75, %74 : vector<4x32xf32>
    %cst_38 = arith.constant 5.000000e-01 : f32
    %77 = vector.broadcast %cst_38 : f32 to vector<4x32xf32>
    %78 = arith.addf %76, %77 : vector<4x32xf32>
    %79 = arith.mulf %68, %41 : vector<4x32xf32>
    %80 = arith.mulf %60, %70 : vector<4x32xf32>
    %81 = arith.addf %79, %80 : vector<4x32xf32>
    %82 = math.tanh %81 : vector<4x32xf32>
    %83 = arith.mulf %78, %82 : vector<4x32xf32>
    %84 = vector.extract_strided_slice %83 {offsets = [0, 0], sizes = [4, 16], strides = [1, 1]} : vector<4x32xf32> to vector<4x16xf32>
    %85 = vector.shape_cast %84 : vector<4x16xf32> to vector<4x1x16xf32>
    %c0_39 = arith.constant 0 : index
    %c1 = arith.constant 1 : index
    %c0_40 = arith.constant 0 : index
    %86 = vector.load %arg15[%c0_39, %c1, %c0_40] : memref<4x8x16xf32, #tpu.memory_space<vmem>>, vector<4x1x16xf32>
    tpu.vector_store %arg15[%c0_39, %c1, %c0_40], %85 {strides = array<i32>} : memref<4x8x16xf32, #tpu.memory_space<vmem>>, vector<4x1x16xf32>,
    %87 = vector.extract_strided_slice %83 {offsets = [0, 16], sizes = [4, 16], strides = [1, 1]} : vector<4x32xf32> to vector<4x16xf32>
    %88 = vector.shape_cast %87 : vector<4x16xf32> to vector<4x1x16xf32>
    %c0_41 = arith.constant 0 : index
    %c6 = arith.constant 6 : index
    %c0_42 = arith.constant 0 : index
    %89 = vector.load %arg16[%c0_41, %c6, %c0_42] : memref<4x8x16xf32, #tpu.memory_space<vmem>>, vector<4x1x16xf32>
    tpu.vector_store %arg16[%c0_41, %c6, %c0_42], %88 {strides = array<i32>} : memref<4x8x16xf32, #tpu.memory_space<vmem>>, vector<4x1x16xf32>,
    %c8 = arith.constant 8 : index
    %c0_43 = arith.constant 0 : index
    %90 = vector.load %arg14[%c8, %c0_43] : memref<32x128xf32, #tpu.memory_space<vmem>>, vector<4x128xf32>
    %cst_44 = arith.constant dense<0.000000e+00> : vector<4x128xf32>
    %91 = tpu.matmul %83, %7, %cst_44 {dimension_numbers = #tpu.dot_dimension_numbers<[1], [0], [0], [1], [0, 0, 1, 1], [], []>} : vector<4x32xf32>, vector<32x128xf32>, vector<4x128xf32> -> vector<4x128xf32>
    %92 = arith.addf %90, %91 : vector<4x128xf32>
    %93 = vector.extract_strided_slice %92 {offsets = [0, 0], sizes = [4, 32], strides = [1, 1]} : vector<4x128xf32> to vector<4x32xf32>
    %cst_45 = arith.constant 5.000000e-01 : f32
    %94 = vector.broadcast %cst_45 : f32 to vector<4x32xf32>
    %95 = arith.mulf %94, %93 : vector<4x32xf32>
    %96 = math.tanh %95 : vector<4x32xf32>
    %cst_46 = arith.constant 5.000000e-01 : f32
    %97 = vector.broadcast %cst_46 : f32 to vector<4x32xf32>
    %98 = arith.mulf %97, %96 : vector<4x32xf32>
    %cst_47 = arith.constant 5.000000e-01 : f32
    %99 = vector.broadcast %cst_47 : f32 to vector<4x32xf32>
    %100 = arith.addf %98, %99 : vector<4x32xf32>
    %101 = vector.extract_strided_slice %92 {offsets = [0, 32], sizes = [4, 32], strides = [1, 1]} : vector<4x128xf32> to vector<4x32xf32>
    %cst_48 = arith.constant 5.000000e-01 : f32
    %102 = vector.broadcast %cst_48 : f32 to vector<4x32xf32>
    %103 = arith.mulf %102, %101 : vector<4x32xf32>
    %104 = math.tanh %103 : vector<4x32xf32>
    %cst_49 = arith.constant 5.000000e-01 : f32
    %105 = vector.broadcast %cst_49 : f32 to vector<4x32xf32>
    %106 = arith.mulf %105, %104 : vector<4x32xf32>
    %cst_50 = arith.constant 5.000000e-01 : f32
    %107 = vector.broadcast %cst_50 : f32 to vector<4x32xf32>
    %108 = arith.addf %106, %107 : vector<4x32xf32>
    %109 = vector.extract_strided_slice %92 {offsets = [0, 64], sizes = [4, 32], strides = [1, 1]} : vector<4x128xf32> to vector<4x32xf32>
    %110 = math.tanh %109 : vector<4x32xf32>
    %111 = vector.extract_strided_slice %92 {offsets = [0, 96], sizes = [4, 32], strides = [1, 1]} : vector<4x128xf32> to vector<4x32xf32>
    %cst_51 = arith.constant 5.000000e-01 : f32
    %112 = vector.broadcast %cst_51 : f32 to vector<4x32xf32>
    %113 = arith.mulf %112, %111 : vector<4x32xf32>
    %114 = math.tanh %113 : vector<4x32xf32>
    %cst_52 = arith.constant 5.000000e-01 : f32
    %115 = vector.broadcast %cst_52 : f32 to vector<4x32xf32>
    %116 = arith.mulf %115, %114 : vector<4x32xf32>
    %cst_53 = arith.constant 5.000000e-01 : f32
    %117 = vector.broadcast %cst_53 : f32 to vector<4x32xf32>
    %118 = arith.addf %116, %117 : vector<4x32xf32>
    %119 = arith.mulf %108, %81 : vector<4x32xf32>
    %120 = arith.mulf %100, %110 : vector<4x32xf32>
    %121 = arith.addf %119, %120 : vector<4x32xf32>
    %122 = math.tanh %121 : vector<4x32xf32>
    %123 = arith.mulf %118, %122 : vector<4x32xf32>
    %124 = vector.extract_strided_slice %123 {offsets = [0, 0], sizes = [4, 16], strides = [1, 1]} : vector<4x32xf32> to vector<4x16xf32>
    %125 = vector.shape_cast %124 : vector<4x16xf32> to vector<4x1x16xf32>
    %c0_54 = arith.constant 0 : index
    %c2 = arith.constant 2 : index
    %c0_55 = arith.constant 0 : index
    %126 = vector.load %arg15[%c0_54, %c2, %c0_55] : memref<4x8x16xf32, #tpu.memory_space<vmem>>, vector<4x1x16xf32>
    tpu.vector_store %arg15[%c0_54, %c2, %c0_55], %125 {strides = array<i32>} : memref<4x8x16xf32, #tpu.memory_space<vmem>>, vector<4x1x16xf32>,
    %127 = vector.extract_strided_slice %123 {offsets = [0, 16], sizes = [4, 16], strides = [1, 1]} : vector<4x32xf32> to vector<4x16xf32>
    %128 = vector.shape_cast %127 : vector<4x16xf32> to vector<4x1x16xf32>
    %c0_56 = arith.constant 0 : index
    %c5 = arith.constant 5 : index
    %c0_57 = arith.constant 0 : index
    %129 = vector.load %arg16[%c0_56, %c5, %c0_57] : memref<4x8x16xf32, #tpu.memory_space<vmem>>, vector<4x1x16xf32>
    tpu.vector_store %arg16[%c0_56, %c5, %c0_57], %128 {strides = array<i32>} : memref<4x8x16xf32, #tpu.memory_space<vmem>>, vector<4x1x16xf32>,
    %c12 = arith.constant 12 : index
    %c0_58 = arith.constant 0 : index
    %130 = vector.load %arg14[%c12, %c0_58] : memref<32x128xf32, #tpu.memory_space<vmem>>, vector<4x128xf32>
    %cst_59 = arith.constant dense<0.000000e+00> : vector<4x128xf32>
    %131 = tpu.matmul %123, %7, %cst_59 {dimension_numbers = #tpu.dot_dimension_numbers<[1], [0], [0], [1], [0, 0, 1, 1], [], []>} : vector<4x32xf32>, vector<32x128xf32>, vector<4x128xf32> -> vector<4x128xf32>
    %132 = arith.addf %130, %131 : vector<4x128xf32>
    %133 = vector.extract_strided_slice %132 {offsets = [0, 0], sizes = [4, 32], strides = [1, 1]} : vector<4x128xf32> to vector<4x32xf32>
    %cst_60 = arith.constant 5.000000e-01 : f32
    %134 = vector.broadcast %cst_60 : f32 to vector<4x32xf32>
    %135 = arith.mulf %134, %133 : vector<4x32xf32>
    %136 = math.tanh %135 : vector<4x32xf32>
    %cst_61 = arith.constant 5.000000e-01 : f32
    %137 = vector.broadcast %cst_61 : f32 to vector<4x32xf32>
    %138 = arith.mulf %137, %136 : vector<4x32xf32>
    %cst_62 = arith.constant 5.000000e-01 : f32
    %139 = vector.broadcast %cst_62 : f32 to vector<4x32xf32>
    %140 = arith.addf %138, %139 : vector<4x32xf32>
    %141 = vector.extract_strided_slice %132 {offsets = [0, 32], sizes = [4, 32], strides = [1, 1]} : vector<4x128xf32> to vector<4x32xf32>
    %cst_63 = arith.constant 5.000000e-01 : f32
    %142 = vector.broadcast %cst_63 : f32 to vector<4x32xf32>
    %143 = arith.mulf %142, %141 : vector<4x32xf32>
    %144 = math.tanh %143 : vector<4x32xf32>
    %cst_64 = arith.constant 5.000000e-01 : f32
    %145 = vector.broadcast %cst_64 : f32 to vector<4x32xf32>
    %146 = arith.mulf %145, %144 : vector<4x32xf32>
    %cst_65 = arith.constant 5.000000e-01 : f32
    %147 = vector.broadcast %cst_65 : f32 to vector<4x32xf32>
    %148 = arith.addf %146, %147 : vector<4x32xf32>
    %149 = vector.extract_strided_slice %132 {offsets = [0, 64], sizes = [4, 32], strides = [1, 1]} : vector<4x128xf32> to vector<4x32xf32>
    %150 = math.tanh %149 : vector<4x32xf32>
    %151 = vector.extract_strided_slice %132 {offsets = [0, 96], sizes = [4, 32], strides = [1, 1]} : vector<4x128xf32> to vector<4x32xf32>
    %cst_66 = arith.constant 5.000000e-01 : f32
    %152 = vector.broadcast %cst_66 : f32 to vector<4x32xf32>
    %153 = arith.mulf %152, %151 : vector<4x32xf32>
    %154 = math.tanh %153 : vector<4x32xf32>
    %cst_67 = arith.constant 5.000000e-01 : f32
    %155 = vector.broadcast %cst_67 : f32 to vector<4x32xf32>
    %156 = arith.mulf %155, %154 : vector<4x32xf32>
    %cst_68 = arith.constant 5.000000e-01 : f32
    %157 = vector.broadcast %cst_68 : f32 to vector<4x32xf32>
    %158 = arith.addf %156, %157 : vector<4x32xf32>
    %159 = arith.mulf %148, %121 : vector<4x32xf32>
    %160 = arith.mulf %140, %150 : vector<4x32xf32>
    %161 = arith.addf %159, %160 : vector<4x32xf32>
    %162 = math.tanh %161 : vector<4x32xf32>
    %163 = arith.mulf %158, %162 : vector<4x32xf32>
    %164 = vector.extract_strided_slice %163 {offsets = [0, 0], sizes = [4, 16], strides = [1, 1]} : vector<4x32xf32> to vector<4x16xf32>
    %165 = vector.shape_cast %164 : vector<4x16xf32> to vector<4x1x16xf32>
    %c0_69 = arith.constant 0 : index
    %c3 = arith.constant 3 : index
    %c0_70 = arith.constant 0 : index
    %166 = vector.load %arg15[%c0_69, %c3, %c0_70] : memref<4x8x16xf32, #tpu.memory_space<vmem>>, vector<4x1x16xf32>
    tpu.vector_store %arg15[%c0_69, %c3, %c0_70], %165 {strides = array<i32>} : memref<4x8x16xf32, #tpu.memory_space<vmem>>, vector<4x1x16xf32>,
    %167 = vector.extract_strided_slice %163 {offsets = [0, 16], sizes = [4, 16], strides = [1, 1]} : vector<4x32xf32> to vector<4x16xf32>
    %168 = vector.shape_cast %167 : vector<4x16xf32> to vector<4x1x16xf32>
    %c0_71 = arith.constant 0 : index
    %c4_72 = arith.constant 4 : index
    %c0_73 = arith.constant 0 : index
    %169 = vector.load %arg16[%c0_71, %c4_72, %c0_73] : memref<4x8x16xf32, #tpu.memory_space<vmem>>, vector<4x1x16xf32>
    tpu.vector_store %arg16[%c0_71, %c4_72, %c0_73], %168 {strides = array<i32>} : memref<4x8x16xf32, #tpu.memory_space<vmem>>, vector<4x1x16xf32>,
    %c16 = arith.constant 16 : index
    %c0_74 = arith.constant 0 : index
    %170 = vector.load %arg14[%c16, %c0_74] : memref<32x128xf32, #tpu.memory_space<vmem>>, vector<4x128xf32>
    %cst_75 = arith.constant dense<0.000000e+00> : vector<4x128xf32>
    %171 = tpu.matmul %163, %7, %cst_75 {dimension_numbers = #tpu.dot_dimension_numbers<[1], [0], [0], [1], [0, 0, 1, 1], [], []>} : vector<4x32xf32>, vector<32x128xf32>, vector<4x128xf32> -> vector<4x128xf32>
    %172 = arith.addf %170, %171 : vector<4x128xf32>
    %173 = vector.extract_strided_slice %172 {offsets = [0, 0], sizes = [4, 32], strides = [1, 1]} : vector<4x128xf32> to vector<4x32xf32>
    %cst_76 = arith.constant 5.000000e-01 : f32
    %174 = vector.broadcast %cst_76 : f32 to vector<4x32xf32>
    %175 = arith.mulf %174, %173 : vector<4x32xf32>
    %176 = math.tanh %175 : vector<4x32xf32>
    %cst_77 = arith.constant 5.000000e-01 : f32
    %177 = vector.broadcast %cst_77 : f32 to vector<4x32xf32>
    %178 = arith.mulf %177, %176 : vector<4x32xf32>
    %cst_78 = arith.constant 5.000000e-01 : f32
    %179 = vector.broadcast %cst_78 : f32 to vector<4x32xf32>
    %180 = arith.addf %178, %179 : vector<4x32xf32>
    %181 = vector.extract_strided_slice %172 {offsets = [0, 32], sizes = [4, 32], strides = [1, 1]} : vector<4x128xf32> to vector<4x32xf32>
    %cst_79 = arith.constant 5.000000e-01 : f32
    %182 = vector.broadcast %cst_79 : f32 to vector<4x32xf32>
    %183 = arith.mulf %182, %181 : vector<4x32xf32>
    %184 = math.tanh %183 : vector<4x32xf32>
    %cst_80 = arith.constant 5.000000e-01 : f32
    %185 = vector.broadcast %cst_80 : f32 to vector<4x32xf32>
    %186 = arith.mulf %185, %184 : vector<4x32xf32>
    %cst_81 = arith.constant 5.000000e-01 : f32
    %187 = vector.broadcast %cst_81 : f32 to vector<4x32xf32>
    %188 = arith.addf %186, %187 : vector<4x32xf32>
    %189 = vector.extract_strided_slice %172 {offsets = [0, 64], sizes = [4, 32], strides = [1, 1]} : vector<4x128xf32> to vector<4x32xf32>
    %190 = math.tanh %189 : vector<4x32xf32>
    %191 = vector.extract_strided_slice %172 {offsets = [0, 96], sizes = [4, 32], strides = [1, 1]} : vector<4x128xf32> to vector<4x32xf32>
    %cst_82 = arith.constant 5.000000e-01 : f32
    %192 = vector.broadcast %cst_82 : f32 to vector<4x32xf32>
    %193 = arith.mulf %192, %191 : vector<4x32xf32>
    %194 = math.tanh %193 : vector<4x32xf32>
    %cst_83 = arith.constant 5.000000e-01 : f32
    %195 = vector.broadcast %cst_83 : f32 to vector<4x32xf32>
    %196 = arith.mulf %195, %194 : vector<4x32xf32>
    %cst_84 = arith.constant 5.000000e-01 : f32
    %197 = vector.broadcast %cst_84 : f32 to vector<4x32xf32>
    %198 = arith.addf %196, %197 : vector<4x32xf32>
    %199 = arith.mulf %188, %161 : vector<4x32xf32>
    %200 = arith.mulf %180, %190 : vector<4x32xf32>
    %201 = arith.addf %199, %200 : vector<4x32xf32>
    %202 = math.tanh %201 : vector<4x32xf32>
    %203 = arith.mulf %198, %202 : vector<4x32xf32>
    %204 = vector.extract_strided_slice %203 {offsets = [0, 0], sizes = [4, 16], strides = [1, 1]} : vector<4x32xf32> to vector<4x16xf32>
    %205 = vector.shape_cast %204 : vector<4x16xf32> to vector<4x1x16xf32>
    %c0_85 = arith.constant 0 : index
    %c4_86 = arith.constant 4 : index
    %c0_87 = arith.constant 0 : index
    %206 = vector.load %arg15[%c0_85, %c4_86, %c0_87] : memref<4x8x16xf32, #tpu.memory_space<vmem>>, vector<4x1x16xf32>
    tpu.vector_store %arg15[%c0_85, %c4_86, %c0_87], %205 {strides = array<i32>} : memref<4x8x16xf32, #tpu.memory_space<vmem>>, vector<4x1x16xf32>,
    %207 = vector.extract_strided_slice %203 {offsets = [0, 16], sizes = [4, 16], strides = [1, 1]} : vector<4x32xf32> to vector<4x16xf32>
    %208 = vector.shape_cast %207 : vector<4x16xf32> to vector<4x1x16xf32>
    %c0_88 = arith.constant 0 : index
    %c3_89 = arith.constant 3 : index
    %c0_90 = arith.constant 0 : index
    %209 = vector.load %arg16[%c0_88, %c3_89, %c0_90] : memref<4x8x16xf32, #tpu.memory_space<vmem>>, vector<4x1x16xf32>
    tpu.vector_store %arg16[%c0_88, %c3_89, %c0_90], %208 {strides = array<i32>} : memref<4x8x16xf32, #tpu.memory_space<vmem>>, vector<4x1x16xf32>,
    %c20 = arith.constant 20 : index
    %c0_91 = arith.constant 0 : index
    %210 = vector.load %arg14[%c20, %c0_91] : memref<32x128xf32, #tpu.memory_space<vmem>>, vector<4x128xf32>
    %cst_92 = arith.constant dense<0.000000e+00> : vector<4x128xf32>
    %211 = tpu.matmul %203, %7, %cst_92 {dimension_numbers = #tpu.dot_dimension_numbers<[1], [0], [0], [1], [0, 0, 1, 1], [], []>} : vector<4x32xf32>, vector<32x128xf32>, vector<4x128xf32> -> vector<4x128xf32>
    %212 = arith.addf %210, %211 : vector<4x128xf32>
    %213 = vector.extract_strided_slice %212 {offsets = [0, 0], sizes = [4, 32], strides = [1, 1]} : vector<4x128xf32> to vector<4x32xf32>
    %cst_93 = arith.constant 5.000000e-01 : f32
    %214 = vector.broadcast %cst_93 : f32 to vector<4x32xf32>
    %215 = arith.mulf %214, %213 : vector<4x32xf32>
    %216 = math.tanh %215 : vector<4x32xf32>
    %cst_94 = arith.constant 5.000000e-01 : f32
    %217 = vector.broadcast %cst_94 : f32 to vector<4x32xf32>
    %218 = arith.mulf %217, %216 : vector<4x32xf32>
    %cst_95 = arith.constant 5.000000e-01 : f32
    %219 = vector.broadcast %cst_95 : f32 to vector<4x32xf32>
    %220 = arith.addf %218, %219 : vector<4x32xf32>
    %221 = vector.extract_strided_slice %212 {offsets = [0, 32], sizes = [4, 32], strides = [1, 1]} : vector<4x128xf32> to vector<4x32xf32>
    %cst_96 = arith.constant 5.000000e-01 : f32
    %222 = vector.broadcast %cst_96 : f32 to vector<4x32xf32>
    %223 = arith.mulf %222, %221 : vector<4x32xf32>
    %224 = math.tanh %223 : vector<4x32xf32>
    %cst_97 = arith.constant 5.000000e-01 : f32
    %225 = vector.broadcast %cst_97 : f32 to vector<4x32xf32>
    %226 = arith.mulf %225, %224 : vector<4x32xf32>
    %cst_98 = arith.constant 5.000000e-01 : f32
    %227 = vector.broadcast %cst_98 : f32 to vector<4x32xf32>
    %228 = arith.addf %226, %227 : vector<4x32xf32>
    %229 = vector.extract_strided_slice %212 {offsets = [0, 64], sizes = [4, 32], strides = [1, 1]} : vector<4x128xf32> to vector<4x32xf32>
    %230 = math.tanh %229 : vector<4x32xf32>
    %231 = vector.extract_strided_slice %212 {offsets = [0, 96], sizes = [4, 32], strides = [1, 1]} : vector<4x128xf32> to vector<4x32xf32>
    %cst_99 = arith.constant 5.000000e-01 : f32
    %232 = vector.broadcast %cst_99 : f32 to vector<4x32xf32>
    %233 = arith.mulf %232, %231 : vector<4x32xf32>
    %234 = math.tanh %233 : vector<4x32xf32>
    %cst_100 = arith.constant 5.000000e-01 : f32
    %235 = vector.broadcast %cst_100 : f32 to vector<4x32xf32>
    %236 = arith.mulf %235, %234 : vector<4x32xf32>
    %cst_101 = arith.constant 5.000000e-01 : f32
    %237 = vector.broadcast %cst_101 : f32 to vector<4x32xf32>
    %238 = arith.addf %236, %237 : vector<4x32xf32>
    %239 = arith.mulf %228, %201 : vector<4x32xf32>
    %240 = arith.mulf %220, %230 : vector<4x32xf32>
    %241 = arith.addf %239, %240 : vector<4x32xf32>
    %242 = math.tanh %241 : vector<4x32xf32>
    %243 = arith.mulf %238, %242 : vector<4x32xf32>
    %244 = vector.extract_strided_slice %243 {offsets = [0, 0], sizes = [4, 16], strides = [1, 1]} : vector<4x32xf32> to vector<4x16xf32>
    %245 = vector.shape_cast %244 : vector<4x16xf32> to vector<4x1x16xf32>
    %c0_102 = arith.constant 0 : index
    %c5_103 = arith.constant 5 : index
    %c0_104 = arith.constant 0 : index
    %246 = vector.load %arg15[%c0_102, %c5_103, %c0_104] : memref<4x8x16xf32, #tpu.memory_space<vmem>>, vector<4x1x16xf32>
    tpu.vector_store %arg15[%c0_102, %c5_103, %c0_104], %245 {strides = array<i32>} : memref<4x8x16xf32, #tpu.memory_space<vmem>>, vector<4x1x16xf32>,
    %247 = vector.extract_strided_slice %243 {offsets = [0, 16], sizes = [4, 16], strides = [1, 1]} : vector<4x32xf32> to vector<4x16xf32>
    %248 = vector.shape_cast %247 : vector<4x16xf32> to vector<4x1x16xf32>
    %c0_105 = arith.constant 0 : index
    %c2_106 = arith.constant 2 : index
    %c0_107 = arith.constant 0 : index
    %249 = vector.load %arg16[%c0_105, %c2_106, %c0_107] : memref<4x8x16xf32, #tpu.memory_space<vmem>>, vector<4x1x16xf32>
    tpu.vector_store %arg16[%c0_105, %c2_106, %c0_107], %248 {strides = array<i32>} : memref<4x8x16xf32, #tpu.memory_space<vmem>>, vector<4x1x16xf32>,
    %c24 = arith.constant 24 : index
    %c0_108 = arith.constant 0 : index
    %250 = vector.load %arg14[%c24, %c0_108] : memref<32x128xf32, #tpu.memory_space<vmem>>, vector<4x128xf32>
    %cst_109 = arith.constant dense<0.000000e+00> : vector<4x128xf32>
    %251 = tpu.matmul %243, %7, %cst_109 {dimension_numbers = #tpu.dot_dimension_numbers<[1], [0], [0], [1], [0, 0, 1, 1], [], []>} : vector<4x32xf32>, vector<32x128xf32>, vector<4x128xf32> -> vector<4x128xf32>
    %252 = arith.addf %250, %251 : vector<4x128xf32>
    %253 = vector.extract_strided_slice %252 {offsets = [0, 0], sizes = [4, 32], strides = [1, 1]} : vector<4x128xf32> to vector<4x32xf32>
    %cst_110 = arith.constant 5.000000e-01 : f32
    %254 = vector.broadcast %cst_110 : f32 to vector<4x32xf32>
    %255 = arith.mulf %254, %253 : vector<4x32xf32>
    %256 = math.tanh %255 : vector<4x32xf32>
    %cst_111 = arith.constant 5.000000e-01 : f32
    %257 = vector.broadcast %cst_111 : f32 to vector<4x32xf32>
    %258 = arith.mulf %257, %256 : vector<4x32xf32>
    %cst_112 = arith.constant 5.000000e-01 : f32
    %259 = vector.broadcast %cst_112 : f32 to vector<4x32xf32>
    %260 = arith.addf %258, %259 : vector<4x32xf32>
    %261 = vector.extract_strided_slice %252 {offsets = [0, 32], sizes = [4, 32], strides = [1, 1]} : vector<4x128xf32> to vector<4x32xf32>
    %cst_113 = arith.constant 5.000000e-01 : f32
    %262 = vector.broadcast %cst_113 : f32 to vector<4x32xf32>
    %263 = arith.mulf %262, %261 : vector<4x32xf32>
    %264 = math.tanh %263 : vector<4x32xf32>
    %cst_114 = arith.constant 5.000000e-01 : f32
    %265 = vector.broadcast %cst_114 : f32 to vector<4x32xf32>
    %266 = arith.mulf %265, %264 : vector<4x32xf32>
    %cst_115 = arith.constant 5.000000e-01 : f32
    %267 = vector.broadcast %cst_115 : f32 to vector<4x32xf32>
    %268 = arith.addf %266, %267 : vector<4x32xf32>
    %269 = vector.extract_strided_slice %252 {offsets = [0, 64], sizes = [4, 32], strides = [1, 1]} : vector<4x128xf32> to vector<4x32xf32>
    %270 = math.tanh %269 : vector<4x32xf32>
    %271 = vector.extract_strided_slice %252 {offsets = [0, 96], sizes = [4, 32], strides = [1, 1]} : vector<4x128xf32> to vector<4x32xf32>
    %cst_116 = arith.constant 5.000000e-01 : f32
    %272 = vector.broadcast %cst_116 : f32 to vector<4x32xf32>
    %273 = arith.mulf %272, %271 : vector<4x32xf32>
    %274 = math.tanh %273 : vector<4x32xf32>
    %cst_117 = arith.constant 5.000000e-01 : f32
    %275 = vector.broadcast %cst_117 : f32 to vector<4x32xf32>
    %276 = arith.mulf %275, %274 : vector<4x32xf32>
    %cst_118 = arith.constant 5.000000e-01 : f32
    %277 = vector.broadcast %cst_118 : f32 to vector<4x32xf32>
    %278 = arith.addf %276, %277 : vector<4x32xf32>
    %279 = arith.mulf %268, %241 : vector<4x32xf32>
    %280 = arith.mulf %260, %270 : vector<4x32xf32>
    %281 = arith.addf %279, %280 : vector<4x32xf32>
    %282 = math.tanh %281 : vector<4x32xf32>
    %283 = arith.mulf %278, %282 : vector<4x32xf32>
    %284 = vector.extract_strided_slice %283 {offsets = [0, 0], sizes = [4, 16], strides = [1, 1]} : vector<4x32xf32> to vector<4x16xf32>
    %285 = vector.shape_cast %284 : vector<4x16xf32> to vector<4x1x16xf32>
    %c0_119 = arith.constant 0 : index
    %c6_120 = arith.constant 6 : index
    %c0_121 = arith.constant 0 : index
    %286 = vector.load %arg15[%c0_119, %c6_120, %c0_121] : memref<4x8x16xf32, #tpu.memory_space<vmem>>, vector<4x1x16xf32>
    tpu.vector_store %arg15[%c0_119, %c6_120, %c0_121], %285 {strides = array<i32>} : memref<4x8x16xf32, #tpu.memory_space<vmem>>, vector<4x1x16xf32>,
    %287 = vector.extract_strided_slice %283 {offsets = [0, 16], sizes = [4, 16], strides = [1, 1]} : vector<4x32xf32> to vector<4x16xf32>
    %288 = vector.shape_cast %287 : vector<4x16xf32> to vector<4x1x16xf32>
    %c0_122 = arith.constant 0 : index
    %c1_123 = arith.constant 1 : index
    %c0_124 = arith.constant 0 : index
    %289 = vector.load %arg16[%c0_122, %c1_123, %c0_124] : memref<4x8x16xf32, #tpu.memory_space<vmem>>, vector<4x1x16xf32>
    tpu.vector_store %arg16[%c0_122, %c1_123, %c0_124], %288 {strides = array<i32>} : memref<4x8x16xf32, #tpu.memory_space<vmem>>, vector<4x1x16xf32>,
    %c28 = arith.constant 28 : index
    %c0_125 = arith.constant 0 : index
    %290 = vector.load %arg14[%c28, %c0_125] : memref<32x128xf32, #tpu.memory_space<vmem>>, vector<4x128xf32>
    %cst_126 = arith.constant dense<0.000000e+00> : vector<4x128xf32>
    %291 = tpu.matmul %283, %7, %cst_126 {dimension_numbers = #tpu.dot_dimension_numbers<[1], [0], [0], [1], [0, 0, 1, 1], [], []>} : vector<4x32xf32>, vector<32x128xf32>, vector<4x128xf32> -> vector<4x128xf32>
    %292 = arith.addf %290, %291 : vector<4x128xf32>
    %293 = vector.extract_strided_slice %292 {offsets = [0, 0], sizes = [4, 32], strides = [1, 1]} : vector<4x128xf32> to vector<4x32xf32>
    %cst_127 = arith.constant 5.000000e-01 : f32
    %294 = vector.broadcast %cst_127 : f32 to vector<4x32xf32>
    %295 = arith.mulf %294, %293 : vector<4x32xf32>
    %296 = math.tanh %295 : vector<4x32xf32>
    %cst_128 = arith.constant 5.000000e-01 : f32
    %297 = vector.broadcast %cst_128 : f32 to vector<4x32xf32>
    %298 = arith.mulf %297, %296 : vector<4x32xf32>
    %cst_129 = arith.constant 5.000000e-01 : f32
    %299 = vector.broadcast %cst_129 : f32 to vector<4x32xf32>
    %300 = arith.addf %298, %299 : vector<4x32xf32>
    %301 = vector.extract_strided_slice %292 {offsets = [0, 32], sizes = [4, 32], strides = [1, 1]} : vector<4x128xf32> to vector<4x32xf32>
    %cst_130 = arith.constant 5.000000e-01 : f32
    %302 = vector.broadcast %cst_130 : f32 to vector<4x32xf32>
    %303 = arith.mulf %302, %301 : vector<4x32xf32>
    %304 = math.tanh %303 : vector<4x32xf32>
    %cst_131 = arith.constant 5.000000e-01 : f32
    %305 = vector.broadcast %cst_131 : f32 to vector<4x32xf32>
    %306 = arith.mulf %305, %304 : vector<4x32xf32>
    %cst_132 = arith.constant 5.000000e-01 : f32
    %307 = vector.broadcast %cst_132 : f32 to vector<4x32xf32>
    %308 = arith.addf %306, %307 : vector<4x32xf32>
    %309 = vector.extract_strided_slice %292 {offsets = [0, 64], sizes = [4, 32], strides = [1, 1]} : vector<4x128xf32> to vector<4x32xf32>
    %310 = math.tanh %309 : vector<4x32xf32>
    %311 = vector.extract_strided_slice %292 {offsets = [0, 96], sizes = [4, 32], strides = [1, 1]} : vector<4x128xf32> to vector<4x32xf32>
    %cst_133 = arith.constant 5.000000e-01 : f32
    %312 = vector.broadcast %cst_133 : f32 to vector<4x32xf32>
    %313 = arith.mulf %312, %311 : vector<4x32xf32>
    %314 = math.tanh %313 : vector<4x32xf32>
    %cst_134 = arith.constant 5.000000e-01 : f32
    %315 = vector.broadcast %cst_134 : f32 to vector<4x32xf32>
    %316 = arith.mulf %315, %314 : vector<4x32xf32>
    %cst_135 = arith.constant 5.000000e-01 : f32
    %317 = vector.broadcast %cst_135 : f32 to vector<4x32xf32>
    %318 = arith.addf %316, %317 : vector<4x32xf32>
    %319 = arith.mulf %308, %281 : vector<4x32xf32>
    %320 = arith.mulf %300, %310 : vector<4x32xf32>
    %321 = arith.addf %319, %320 : vector<4x32xf32>
    %322 = math.tanh %321 : vector<4x32xf32>
    %323 = arith.mulf %318, %322 : vector<4x32xf32>
    %324 = vector.extract_strided_slice %323 {offsets = [0, 0], sizes = [4, 16], strides = [1, 1]} : vector<4x32xf32> to vector<4x16xf32>
    %325 = vector.shape_cast %324 : vector<4x16xf32> to vector<4x1x16xf32>
    %c0_136 = arith.constant 0 : index
    %c7_137 = arith.constant 7 : index
    %c0_138 = arith.constant 0 : index
    %326 = vector.load %arg15[%c0_136, %c7_137, %c0_138] : memref<4x8x16xf32, #tpu.memory_space<vmem>>, vector<4x1x16xf32>
    tpu.vector_store %arg15[%c0_136, %c7_137, %c0_138], %325 {strides = array<i32>} : memref<4x8x16xf32, #tpu.memory_space<vmem>>, vector<4x1x16xf32>,
    %327 = vector.extract_strided_slice %323 {offsets = [0, 16], sizes = [4, 16], strides = [1, 1]} : vector<4x32xf32> to vector<4x16xf32>
    %328 = vector.shape_cast %327 : vector<4x16xf32> to vector<4x1x16xf32>
    %c0_139 = arith.constant 0 : index
    %c0_140 = arith.constant 0 : index
    %c0_141 = arith.constant 0 : index
    %329 = vector.load %arg16[%c0_139, %c0_140, %c0_141] : memref<4x8x16xf32, #tpu.memory_space<vmem>>, vector<4x1x16xf32>
    tpu.vector_store %arg16[%c0_139, %c0_140, %c0_141], %328 {strides = array<i32>} : memref<4x8x16xf32, #tpu.memory_space<vmem>>, vector<4x1x16xf32>,
    %c0_142 = arith.constant 0 : index
    %c0_143 = arith.constant 0 : index
    %c0_144 = arith.constant 0 : index
    %330 = vector.load %arg15[%c0_142, %c0_143, %c0_144] : memref<4x8x16xf32, #tpu.memory_space<vmem>>, vector<4x8x16xf32>
    %331 = vector.shape_cast %330 : vector<4x8x16xf32> to vector<32x16xf32>
    %c0_145 = arith.constant 0 : index
    %c0_146 = arith.constant 0 : index
    %c0_147 = arith.constant 0 : index
    %332 = vector.load %arg16[%c0_145, %c0_146, %c0_147] : memref<4x8x16xf32, #tpu.memory_space<vmem>>, vector<4x8x16xf32>
    %333 = vector.shape_cast %332 : vector<4x8x16xf32> to vector<32x16xf32>
    %c0_148 = arith.constant 0 : index
    %c0_149 = arith.constant 0 : index
    %334 = vector.load %arg8[%c0_148, %c0_149] : memref<32x32xf32, #tpu.memory_space<vmem>>, vector<32x32xf32>
    %335 = vector.extract_strided_slice %334 {offsets = [0, 0], sizes = [16, 32], strides = [1, 1]} : vector<32x32xf32> to vector<16x32xf32>
    %cst_150 = arith.constant dense<0.000000e+00> : vector<32x32xf32>
    %336 = tpu.matmul %331, %335, %cst_150 {dimension_numbers = #tpu.dot_dimension_numbers<[1], [0], [0], [1], [0, 0, 1, 1], [], []>} : vector<32x16xf32>, vector<16x32xf32>, vector<32x32xf32> -> vector<32x32xf32>
    %337 = vector.extract_strided_slice %334 {offsets = [16, 0], sizes = [16, 32], strides = [1, 1]} : vector<32x32xf32> to vector<16x32xf32>
    %cst_151 = arith.constant dense<0.000000e+00> : vector<32x32xf32>
    %338 = tpu.matmul %333, %337, %cst_151 {dimension_numbers = #tpu.dot_dimension_numbers<[1], [0], [0], [1], [0, 0, 1, 1], [], []>} : vector<32x16xf32>, vector<16x32xf32>, vector<32x32xf32> -> vector<32x32xf32>
    %339 = arith.addf %336, %338 : vector<32x32xf32>
    %c0_152 = arith.constant 0 : index
    %c0_153 = arith.constant 0 : index
    %340 = vector.load %arg9[%c0_152, %c0_153] : memref<1x32xf32, #tpu.memory_space<vmem>>, vector<1x32xf32>
    %341 = vector.broadcast %340 : vector<1x32xf32> to vector<32x32xf32>
    %342 = arith.addf %339, %341 : vector<32x32xf32>
    %343 = math.tanh %342 : vector<32x32xf32>
    %c0_154 = arith.constant 0 : index
    %c0_155 = arith.constant 0 : index
    %344 = vector.load %arg10[%c0_154, %c0_155] : memref<1x32xf32, #tpu.memory_space<vmem>>, vector<1x32xf32>
    %345 = vector.broadcast %344 : vector<1x32xf32> to vector<32x32xf32>
    %346 = arith.mulf %343, %345 : vector<32x32xf32>
    %cst_156 = arith.constant dense<0.000000e+00> : vector<32xf32>
    %347 = vector.multi_reduction <add>, %346, %cst_156 [1] : vector<32x32xf32> to vector<32xf32>
    %348 = vector.shape_cast %347 : vector<32xf32> to vector<32x1xf32>
    %349 = math.exp %348 : vector<32x1xf32>
    %c0_157 = arith.constant 0 : index
    %c0_158 = arith.constant 0 : index
    %350 = vector.load %arg1[%c0_157, %c0_158] : memref<32x1xf32, #tpu.memory_space<vmem>>, vector<32x1xf32>
    %351 = arith.mulf %349, %350 : vector<32x1xf32>
    %352 = vector.broadcast %351 : vector<32x1xf32> to vector<32x16xf32>
    %353 = arith.mulf %352, %331 : vector<32x16xf32>
    %354 = vector.broadcast %351 : vector<32x1xf32> to vector<32x16xf32>
    %355 = arith.mulf %354, %333 : vector<32x16xf32>
    %c0_159 = arith.constant 0 : index
    %c0_160 = arith.constant 0 : index
    %356 = vector.load %arg2[%c0_159, %c0_160] : memref<2x32xf32, #tpu.memory_space<vmem>>, vector<2x32xf32>
    %c0_161 = arith.constant 0 : index
    %c0_162 = arith.constant 0 : index
    %357 = vector.load %arg3[%c0_161, %c0_162] : memref<2x32xf32, #tpu.memory_space<vmem>>, vector<2x32xf32>
    %cst_163 = arith.constant dense<0.000000e+00> : vector<2x1xf32>
    %358 = tpu.matmul %356, %351, %cst_163 {dimension_numbers = #tpu.dot_dimension_numbers<[1], [0], [0], [1], [0, 0, 1, 1], [], []>} : vector<2x32xf32>, vector<32x1xf32>, vector<2x1xf32> -> vector<2x1xf32>
    %cst_164 = arith.constant 9.99999971E-10 : f32
    %359 = vector.broadcast %cst_164 : f32 to vector<2x1xf32>
    %360 = arith.addf %358, %359 : vector<2x1xf32>
    %361 = tpu.reciprocal %360 {approx = true} : vector<2x1xf32> -> vector<2x1xf32>
    %cst_165 = arith.constant dense<0.000000e+00> : vector<2x1xf32>
    %362 = tpu.matmul %357, %351, %cst_165 {dimension_numbers = #tpu.dot_dimension_numbers<[1], [0], [0], [1], [0, 0, 1, 1], [], []>} : vector<2x32xf32>, vector<32x1xf32>, vector<2x1xf32> -> vector<2x1xf32>
    %cst_166 = arith.constant 9.99999971E-10 : f32
    %363 = vector.broadcast %cst_166 : f32 to vector<2x1xf32>
    %364 = arith.addf %362, %363 : vector<2x1xf32>
    %365 = tpu.reciprocal %364 {approx = true} : vector<2x1xf32> -> vector<2x1xf32>
    %cst_167 = arith.constant dense<0.000000e+00> : vector<2x16xf32>
    %366 = tpu.matmul %356, %353, %cst_167 {dimension_numbers = #tpu.dot_dimension_numbers<[1], [0], [0], [1], [0, 0, 1, 1], [], []>} : vector<2x32xf32>, vector<32x16xf32>, vector<2x16xf32> -> vector<2x16xf32>
    %367 = vector.broadcast %361 : vector<2x1xf32> to vector<2x16xf32>
    %368 = arith.mulf %366, %367 : vector<2x16xf32>
    %cst_168 = arith.constant dense<0.000000e+00> : vector<2x16xf32>
    %369 = tpu.matmul %356, %355, %cst_168 {dimension_numbers = #tpu.dot_dimension_numbers<[1], [0], [0], [1], [0, 0, 1, 1], [], []>} : vector<2x32xf32>, vector<32x16xf32>, vector<2x16xf32> -> vector<2x16xf32>
    %370 = vector.broadcast %361 : vector<2x1xf32> to vector<2x16xf32>
    %371 = arith.mulf %369, %370 : vector<2x16xf32>
    %cst_169 = arith.constant dense<0.000000e+00> : vector<2x16xf32>
    %372 = tpu.matmul %357, %353, %cst_169 {dimension_numbers = #tpu.dot_dimension_numbers<[1], [0], [0], [1], [0, 0, 1, 1], [], []>} : vector<2x32xf32>, vector<32x16xf32>, vector<2x16xf32> -> vector<2x16xf32>
    %373 = vector.broadcast %365 : vector<2x1xf32> to vector<2x16xf32>
    %374 = arith.mulf %372, %373 : vector<2x16xf32>
    %cst_170 = arith.constant dense<0.000000e+00> : vector<2x16xf32>
    %375 = tpu.matmul %357, %355, %cst_170 {dimension_numbers = #tpu.dot_dimension_numbers<[1], [0], [0], [1], [0, 0, 1, 1], [], []>} : vector<2x32xf32>, vector<32x16xf32>, vector<2x16xf32> -> vector<2x16xf32>
    %376 = vector.broadcast %365 : vector<2x1xf32> to vector<2x16xf32>
    %377 = arith.mulf %375, %376 : vector<2x16xf32>
    %c0_171 = arith.constant 0 : index
    %c0_172 = arith.constant 0 : index
    %378 = vector.load %arg11[%c0_171, %c0_172] : memref<72x2xf32, #tpu.memory_space<vmem>>, vector<72x2xf32>
    %379 = vector.extract_strided_slice %378 {offsets = [0, 0], sizes = [16, 2], strides = [1, 1]} : vector<72x2xf32> to vector<16x2xf32>
    %cst_173 = arith.constant dense<0.000000e+00> : vector<2x2xf32>
    %380 = tpu.matmul %368, %379, %cst_173 {dimension_numbers = #tpu.dot_dimension_numbers<[1], [0], [0], [1], [0, 0, 1, 1], [], []>} : vector<2x16xf32>, vector<16x2xf32>, vector<2x2xf32> -> vector<2x2xf32>
    %381 = vector.extract_strided_slice %378 {offsets = [16, 0], sizes = [16, 2], strides = [1, 1]} : vector<72x2xf32> to vector<16x2xf32>
    %cst_174 = arith.constant dense<0.000000e+00> : vector<2x2xf32>
    %382 = tpu.matmul %371, %381, %cst_174 {dimension_numbers = #tpu.dot_dimension_numbers<[1], [0], [0], [1], [0, 0, 1, 1], [], []>} : vector<2x16xf32>, vector<16x2xf32>, vector<2x2xf32> -> vector<2x2xf32>
    %383 = arith.addf %380, %382 : vector<2x2xf32>
    %384 = vector.extract_strided_slice %378 {offsets = [32, 0], sizes = [16, 2], strides = [1, 1]} : vector<72x2xf32> to vector<16x2xf32>
    %cst_175 = arith.constant dense<0.000000e+00> : vector<2x2xf32>
    %385 = tpu.matmul %374, %384, %cst_175 {dimension_numbers = #tpu.dot_dimension_numbers<[1], [0], [0], [1], [0, 0, 1, 1], [], []>} : vector<2x16xf32>, vector<16x2xf32>, vector<2x2xf32> -> vector<2x2xf32>
    %386 = arith.addf %383, %385 : vector<2x2xf32>
    %387 = vector.extract_strided_slice %378 {offsets = [48, 0], sizes = [16, 2], strides = [1, 1]} : vector<72x2xf32> to vector<16x2xf32>
    %cst_176 = arith.constant dense<0.000000e+00> : vector<2x2xf32>
    %388 = tpu.matmul %377, %387, %cst_176 {dimension_numbers = #tpu.dot_dimension_numbers<[1], [0], [0], [1], [0, 0, 1, 1], [], []>} : vector<2x16xf32>, vector<16x2xf32>, vector<2x2xf32> -> vector<2x2xf32>
    %389 = arith.addf %386, %388 : vector<2x2xf32>
    %c0_177 = arith.constant 0 : index
    %c0_178 = arith.constant 0 : index
    %390 = vector.load %arg4[%c0_177, %c0_178] : memref<2x8xf32, #tpu.memory_space<vmem>>, vector<2x8xf32>
    %391 = vector.extract_strided_slice %378 {offsets = [64, 0], sizes = [8, 2], strides = [1, 1]} : vector<72x2xf32> to vector<8x2xf32>
    %cst_179 = arith.constant dense<0.000000e+00> : vector<2x2xf32>
    %392 = tpu.matmul %390, %391, %cst_179 {dimension_numbers = #tpu.dot_dimension_numbers<[1], [0], [0], [1], [0, 0, 1, 1], [], []>} : vector<2x8xf32>, vector<8x2xf32>, vector<2x2xf32> -> vector<2x2xf32>
    %393 = arith.addf %389, %392 : vector<2x2xf32>
    %c0_180 = arith.constant 0 : index
    %c0_181 = arith.constant 0 : index
    %394 = vector.load %arg12[%c0_180, %c0_181] : memref<1x2xf32, #tpu.memory_space<vmem>>, vector<1x2xf32>
    %395 = vector.broadcast %394 : vector<1x2xf32> to vector<2x2xf32>
    %396 = arith.addf %393, %395 : vector<2x2xf32>
    %cst_182 = arith.constant dense<0xFF800000> : vector<2xf32>
    %397 = vector.multi_reduction <maximumf>, %396, %cst_182 [1] : vector<2x2xf32> to vector<2xf32>
    %398 = vector.shape_cast %397 : vector<2xf32> to vector<2x1xf32>
    %399 = vector.broadcast %398 : vector<2x1xf32> to vector<2x2xf32>
    %400 = arith.subf %396, %399 : vector<2x2xf32>
    %401 = math.exp %400 : vector<2x2xf32>
    %cst_183 = arith.constant dense<0.000000e+00> : vector<2xf32>
    %402 = vector.multi_reduction <add>, %401, %cst_183 [1] : vector<2x2xf32> to vector<2xf32>
    %403 = vector.shape_cast %402 : vector<2xf32> to vector<2x1xf32>
    %404 = tpu.reciprocal %403 {approx = true} : vector<2x1xf32> -> vector<2x1xf32>
    %405 = vector.broadcast %404 : vector<2x1xf32> to vector<2x2xf32>
    %406 = arith.mulf %401, %405 : vector<2x2xf32>
    %c0_184 = arith.constant 0 : index
    %c0_185 = arith.constant 0 : index
    %407 = vector.load %arg13[%c0_184, %c0_185] : memref<2x2xf32, #tpu.memory_space<vmem>>, vector<2x2xf32>
    tpu.vector_store %arg13[%c0_184, %c0_185], %406 {strides = array<i32>} : memref<2x2xf32, #tpu.memory_space<vmem>>, vector<2x2xf32>,
    return
  }
}

</mosaic_0001>

<bundles_post_ra>
// kernel: tpu_custom_call.1
= control target key start
LH: loop header
LB: loop body
LE: loop exit
PB: predicated region body
PF: predicated region fallthrough
CT: control target
= control target key end

     0   :  { %18 = vsyncpa [#allocation6], 0  ;;  %s3970_s0 = inlined_call_operand.vmem [shape: f32[32,64], index: 0, kind: input, shape index: {}]   ;;  %s3971_s1 = inlined_call_operand.vmem [shape: f32[32,1], index: 1, kind: input, shape index: {}]   ;;  %s3972_s2 = inlined_call_operand.vmem [shape: f32[2,32], index: 2, kind: input, shape index: {}]   ;;  %s3973_s3 = inlined_call_operand.vmem [shape: f32[2,32], index: 3, kind: input, shape index: {}]   ;;  %s3974_s4 = inlined_call_operand.vmem [shape: f32[2,8], index: 4, kind: input, shape index: {}]   ;;  %s3975_s5 = inlined_call_operand.vmem [shape: f32[64,128], index: 5, kind: input, shape index: {}]   ;;  %s3976_s6 = inlined_call_operand.hbm [shape: f32[32,128], index: 6, kind: input, shape index: {}]   ;;  %s3977_s7 = inlined_call_operand.vmem [shape: f32[1,128], index: 7, kind: input, shape index: {}]   ;;  %s3978_s8 = inlined_call_operand.hbm [shape: f32[32,32], index: 8, kind: input, shape index: {}]   ;;  %s3979_s9 = inlined_call_operand.vmem [shape: f32[1,32], index: 9, kind: input, shape index: {}]   ;;  %s3980_s10 = inlined_call_operand.vmem [shape: f32[1,32], index: 10, kind: input, shape index: {}]   ;;  %s3981_s11 = inlined_call_operand.vmem [shape: f32[72,2], index: 11, kind: input, shape index: {}]   ;;  %s3982_s12 = inlined_call_operand.vmem [shape: f32[1,2], index: 12, kind: input, shape index: {}]   ;;  %s3983_s13 = inlined_call_operand.hbm [shape: f32[2,2], index: 13, kind: output, shape index: {}]  }
   0x1   :  { %19 = vsyncpa [#allocation9], 0 }
   0x2   :  { %20 = vsyncpa [#allocation7], 0  ;;  %s3239_s25 = smov [#allocation5]  }
   0x3   :  { %s38_s26 = sshll.u32 %s3239_s25, 4  ;;  %s39_s26 = int_to_ptr.vmem [resolvable:$true] %s38_s26 }
   0x4   :  { %s3181_s27 = scalar_lea.vmem %s39_s26, 512  ;;  %p3186_p1 = scmp.lt.s32.totalorder %s39_s26, %s39_s26 }
   0x5   :  { %p3182_p0 = scmp.ne.s32.totalorder %s39_s26, %s3181_s27  ;;  %p3187_p2 = scmp.lt.s32.totalorder %s3181_s27, %s3181_s27 }
   0x7   :  { %p3188_p3 = por %p3187_p2, %p3186_p1 }
   0x9   :  { %p3189_p4 = pnand %p3188_p3, %p3182_p0 }
   0xb   :  { %3192 = shalt.err (!%p3189_p4)
}
   0xc   :  { %s3240_s28 = smov 128   ;;  %s3241_s29 = smov 8  }
   0xd   :  { %44 = dma.hbm_to_vmem [thread:$0]  %s3976_s6, 512, %s39_s26, [#allocation6], %s3240_s28, %s3240_s28, %s3241_s29  }
   0xe   :  { %s3242_s15 = smov [#allocation8]  }
   0xf   :  { %s52_s16 = sshll.u32 %s3242_s15, 4  ;;  %s53_s16 = int_to_ptr.vmem [resolvable:$true] %s52_s16 }
  0x10   :  { %s3201_s17 = scalar_lea.vmem %s53_s16, 512  ;;  %p3206_p6 = scmp.lt.s32.totalorder %s53_s16, %s53_s16 }
  0x11   :  { %p3202_p5 = scmp.ne.s32.totalorder %s53_s16, %s3201_s17  ;;  %p3207_p7 = scmp.lt.s32.totalorder %s3201_s17, %s3201_s17 }
  0x13   :  { %p3208_p8 = por %p3207_p7, %p3206_p6 }
  0x15   :  { %p3209_p9 = pnand %p3208_p8, %p3202_p5 }
  0x17   :  { %3212 = shalt.err (!%p3209_p9)
}
  0x18   :  { %58 = dma.hbm_to_vmem [thread:$0]  %s3978_s8, 512, %s53_s16, [#allocation9], %s3240_s28, %s3240_s28, %s3241_s29  }
  0x19   :  { %3233 = dma.done.wait [#allocation6], 512  }
  0x1a   :  { %3234 = vsyncadd [#allocation6], 4294966784 }
  0x1b   :  { %3235 = dma.done.wait [#allocation9], 512  }
  0x1c   :  { %3236 = vsyncadd [#allocation9], 4294966784  ;;  %v3243_v0 = vmov 0.0   ;;  %vm3244_vm0 = vmmov 0   ;;  %v84_v1 = vld [vmem:[%s3975_s5 + $0x38] sm:$0xff]  ;;  %v83_v2 = vld [vmem:[%s3975_s5 + $0x30] sm:$0xff] }
  0x1d   :  { %2880 = vmatprep.subr.mxu1 %v3243_v0  ;;  %2888 = vmatprep.mubr.msk.f32.mxu1 %vm3244_vm0, %v3243_v0  ;;  %vm92_vm1 = vcmask 523264   ;;  %v82_v3 = vld [vmem:[%s3975_s5 + $0x28] sm:$0xff]  ;;  %v73_v4 = vld [vmem:[%s3970_s0] sm:$0xff]  ;;  %v3343_v5 = vld [vmem:[#allocation5 + $0x18] sm:$0xff]  ;;  %s3245_s21 = smov 64   ;;  %vm199_vm2 = vcmask 261120  }
  0x1e   :  { %2858 = vmatprep.subr.mxu0 %v84_v1  ;;  %2874 = vmatprep.mubr.msk.f32.mxu0 %vm92_vm1, %v73_v4  ;;  %v3345_v6 = vld [vmem:[#allocation5 + $0x10] sm:$0xff]  ;;  %v81_v7 = vld [vmem:[%s3975_s5 + $0x20] sm:$0xff]  ;;  %v3352_v8 = vld [vmem:[#allocation5 + $0x8] sm:$0xff]  ;;  %vm349_vm3 = vcmask 122880   ;;  %vm1579_vm4 = vcmask 130048   ;;  %vm2604_vm5 = vcmask 64512  }
  0x1f   :  { %2859 = vmatpush3.msra.mxu0 %v84_v1  ;;  %2881 = vmatpush3.msra.mxu1 %v3343_v5  ;;  %v80_v9 = vld [vmem:[%s3975_s5 + $0x18] sm:$0xff]  ;;  %v3359_v10 = vld [vmem:[#allocation5] sm:$0xff]  ;;  %v79_v11 = vld [vmem:[%s3975_s5 + $0x10] sm:$0xff]  ;;  %vm2687_vm6 = vcmask 9216  }
  0x20   :  { %2860 = vmatprep.subr.mxu0 %v83_v2  ;;  %2882 = vmatprep.subr.mxu1 %v3243_v0  ;;  %v78_v12 = vld [vmem:[%s3975_s5 + $0x8] sm:$0xff]  ;;  %v77_v13 = vld [vmem:[%s3975_s5] sm:$0xff]  ;;  %v75_v52 = vld [vmem:[%s3970_s0 + $0x10] sm:$0xff] }
  0x21   :  { %2861 = vmatpush3.msra.mxu0 %v83_v2  ;;  %2883 = vmatpush3.msra.mxu1 %v3345_v6  ;;  %v74_v14 = vld [vmem:[%s3970_s0 + $0x8] sm:$0xff]  ;;  %v3401_v17 = vld [vmem:[%s3977_s7] ss:$0 sm:$0xff]  ;;  %s3246_s7 = smov 32   ;;  %v76_v53 = vld [vmem:[%s3970_s0 + $0x18] sm:$0xff]  ;;  %s3248_s0 = smov 16  }
  0x22   :  { %2862 = vmatprep.subr.mxu0 %v82_v3  ;;  %2884 = vmatprep.subr.mxu1 %v3243_v0 }
  0x23   :  { %2863 = vmatpush3.msra.mxu0 %v82_v3  ;;  %2885 = vmatpush3.msra.mxu1 %v3352_v8 }
  0x24   :  { %2864 = vmatprep.subr.mxu0 %v81_v7  ;;  %2886 = vmatprep.subr.mxu1 %v3243_v0 }
  0x25   :  { %2865 = vmatpush3.msra.mxu0 %v81_v7  ;;  %2887 = vmatpush3.msra.mxu1 %v3359_v10 }
  0x26   :  { %2866 = vmatprep.subr.mxu0 %v80_v9  ;;  %2889 = vmatmul.mubr.f32.vlgmr.msra.gmra.mxu1 %v3243_v0 }
  0x27   :  { %2867 = vmatpush3.msra.mxu0 %v80_v9  ;;  %2891 = vmatprep.subr.mxu1 %v3243_v0 }
  0x28   :  { %2868 = vmatprep.subr.mxu0 %v79_v11  ;;  %2892 = vmatpush3.msra.mxu1 %v3343_v5 }
  0x29   :  { %2869 = vmatpush3.msra.mxu0 %v79_v11  ;;  %2893 = vmatprep.subr.mxu1 %v3243_v0 }
  0x2a   :  { %2870 = vmatprep.subr.mxu0 %v78_v12  ;;  %2894 = vmatpush3.msra.mxu1 %v3345_v6 }
  0x2b   :  { %2871 = vmatpush3.msra.mxu0 %v78_v12  ;;  %2895 = vmatprep.subr.mxu1 %v3243_v0 }
  0x2c   :  { %2872 = vmatprep.subr.mxu0 %v77_v13  ;;  %2896 = vmatpush3.msra.mxu1 %v3352_v8 }
  0x2d   :  { %2873 = vmatpush3.msra.mxu0 %v77_v13  ;;  %2897 = vmatprep.subr.mxu1 %v3243_v0 }
  0x2e   :  { %2875 = vmatmul.mubr.msk.f32.vlgmr.msra.gmra.mxu0 %vm92_vm1, %v74_v14  ;;  %2899 = vmatprep.mubr.msk.f32.mxu1 %vm3244_vm0, %v3243_v0 }
  0x2f   :  { %2898 = vmatpush3.msra.mxu1 %v3359_v10  ;;  %2902 = vmatprep.subr.mxu0 %v3243_v0 }
  0x30   :  { %2903 = vmatpush3.msra.mxu0 %v3343_v5  ;;  %2913 = vmatprep.subr.mxu1 %v3243_v0 }
  0x31   :  { %2904 = vmatprep.subr.mxu0 %v3243_v0  ;;  %2877 = vmatprep.mubr.msk.f32.mxu0 %vm92_vm1, %v75_v52 }
  0x32   :  { %2905 = vmatpush3.msra.mxu0 %v3345_v6 }
  0x33   :  { %2906 = vmatprep.subr.mxu0 %v3243_v0  ;;  %2878 = vmatmul.mubr.msk.f32.gmra.mxu0 %vm92_vm1, %v76_v53 }
  0x34   :  { %2907 = vmatpush3.msra.mxu0 %v3352_v8  ;;  %2910 = vmatprep.mubr.msk.f32.mxu0 %vm3244_vm0, %v3243_v0 }
  0x35   :  { %2908 = vmatprep.subr.mxu0 %v3243_v0 }
  0x36   :  { %2909 = vmatpush3.msra.mxu0 %v3359_v10 }
  0x37   :  { %2924 = vmatprep.subr.mxu0 %v3243_v0 }
  0xe6   :  { %v269_v15 = vpop.f32.mrf.mxu1 }
  0xe8   :  { %v2890_v16 = vpop.f32.mrf.mxu1 }
  0xee   :  { %v2876_v18 = vpop.f32.mrf.mxu0 }
  0xef   :  { %v177_v19 = vadd.f32 %v2876_v18, %v3401_v17 }
  0xf0   :  { %v171_v20 = vpop.f32.mrf.mxu0 }
  0xf1   :  { %191 = vst [vmem:[#allocation2 + $0x8] sm:$0xff] %v177_v19  ;;  %v172_v21 = vadd.f32 %v3401_v17, %v171_v20 }
  0xf3   :  { %190 = vst [vmem:[#allocation2] sm:$0xff] %v172_v21  ;;  %v2879_v57 = vpop.f32.mrf.mxu0 }
  0xf4   :  { %v187_v58 = vadd.f32 %v2879_v57, %v3401_v17 }
  0xf5   :  { %v181_v59 = vpop.f32.mrf.mxu0 }
  0xf6   :  { %193 = vst [vmem:[#allocation2 + $0x18] sm:$0xff] %v187_v58  ;;  %v182_v60 = vadd.f32 %v3401_v17, %v181_v59 }
  0xf8   :  { %192 = vst [vmem:[#allocation2 + $0x10] sm:$0xff] %v182_v60  ;;  %v541_v62 = vld [vmem:[#allocation2 + $0x8] sm:$0xf]  ;;  %v712_v21 = vld [vmem:[#allocation2 + $0xc] sm:$0xf] }
  0xfa   :  { %v198_v22 = vld [vmem:[#allocation2] sm:$0xf]  ;;  %v370_v38 = vld [vmem:[#allocation2 + $0x4] sm:$0xf] }
  0xfb   :  { %v273_v23 = vadd.f32 %v269_v15, %v198_v22 }
  0xfd   :  { %3101 = vtanh.f32 %v273_v23  ;;  %v274_v25 = vmul.f32 0.5, %v273_v23 }
  0xff   :  { %3103 = vtanh.f32 %v274_v25  ;;  %v1054_v59 = vld [vmem:[#allocation2 + $0x14] sm:$0xf] }
 0x10a   :  { %v3102_v24 = vpop.eup %3101 }
 0x10b   :  { %281 = vrot.lane.b32.xlu0 %v3102_v24, %s3245_s21 }
 0x10c   :  { %v3104_v26 = vpop.eup %3103 }
 0x10d   :  { %v276_v27 = vmul.f32 0.5, %v3104_v26 }
 0x10f   :  { %v277_v28 = vadd.f32 0.5, %v276_v27 }
 0x111   :  { %v279_v31 = vmul.f32 0.0, %v277_v28 }
 0x17d   :  { %v282_v29 = vpop.permute.xlu0 %281 }
 0x17e   :  { %v284_v30 = vmul.f32 %v282_v29, %v277_v28 }
 0x180   :  { %286 = vrot.lane.b32.xlu0 %v284_v30, %s3246_s7 }
 0x1f2   :  { %v287_v32 = vpop.permute.xlu0 %286 }
 0x1f3   :  { %v289_v33 = vadd.f32 %v287_v32, %v279_v31 }
 0x1f5   :  { %3105 = vtanh.f32 %v289_v33 }
 0x202   :  { %v3106_v34 = vpop.eup %3105 }
 0x203   :  { %292 = vrot.lane.b32.xlu1 %v3106_v34, %s3245_s21 }
 0x275   :  { %v293_v35 = vpop.permute.xlu1 %292 }
 0x276   :  { %v3408_v36 = vmul.f32 %v293_v35, %v277_v28 }
 0x278   :  { %371 = vrot.lane.b32.xlu1 %v3408_v36, %s3246_s7 }
 0x2ea   :  { %v372_v37 = vpop.permute.xlu1 %371 }
 0x2eb   :  { %2900 = vmatmul.mubr.msk.f32.vlgmr.msra.gmra.mxu1 %vm199_vm2, %v372_v37 }
 0x2ec   :  { %2914 = vmatpush3.msra.mxu1 %v3343_v5  ;;  %2921 = vmatprep.mubr.msk.f32.mxu1 %vm3244_vm0, %v3243_v0 }
 0x2ed   :  { %2915 = vmatprep.subr.mxu1 %v3243_v0 }
 0x2ee   :  { %2916 = vmatpush3.msra.mxu1 %v3345_v6 }
 0x2ef   :  { %2917 = vmatprep.subr.mxu1 %v3243_v0 }
 0x2f0   :  { %2918 = vmatpush3.msra.mxu1 %v3352_v8 }
 0x2f1   :  { %2919 = vmatprep.subr.mxu1 %v3243_v0 }
 0x2f2   :  { %2920 = vmatpush3.msra.mxu1 %v3359_v10 }
 0x2f3   :  { %2935 = vmatprep.subr.mxu1 %v3243_v0 }
 0x3ab   :  { %v441_v39 = vpop.f32.mrf.mxu1 }
 0x3ac   :  { %v445_v40 = vadd.f32 %v441_v39, %v370_v38 }
 0x3ad   :  { %v2901_v41 = vpop.f32.mrf.mxu1 }
 0x3ae   :  { %3107 = vtanh.f32 %v445_v40  ;;  %v446_v43 = vmul.f32 0.5, %v445_v40  ;;  %v883_v40 = vld [vmem:[#allocation2 + $0x10] sm:$0xf] }
 0x3b0   :  { %3109 = vtanh.f32 %v446_v43 }
 0x3bb   :  { %v3108_v42 = vpop.eup %3107 }
 0x3bc   :  { %453 = vrot.lane.b32.xlu0 %v3108_v42, %s3245_s21 }
 0x3bd   :  { %v3110_v44 = vpop.eup %3109 }
 0x3be   :  { %v448_v45 = vmul.f32 0.5, %v3110_v44 }
 0x3c0   :  { %v449_v46 = vadd.f32 0.5, %v448_v45 }
 0x3c2   :  { %v451_v49 = vmul.f32 %v449_v46, %v289_v33 }
 0x42e   :  { %v454_v47 = vpop.permute.xlu0 %453 }
 0x42f   :  { %v456_v48 = vmul.f32 %v454_v47, %v449_v46 }
 0x431   :  { %458 = vrot.lane.b32.xlu1 %v456_v48, %s3246_s7 }
 0x4a3   :  { %v459_v50 = vpop.permute.xlu1 %458 }
 0x4a4   :  { %v461_v51 = vadd.f32 %v459_v50, %v451_v49 }
 0x4a6   :  { %3111 = vtanh.f32 %v461_v51 }
 0x4b3   :  { %v3112_v54 = vpop.eup %3111 }
 0x4b4   :  { %464 = vrot.lane.b32.xlu0 %v3112_v54, %s3245_s21 }
 0x526   :  { %v465_v55 = vpop.permute.xlu0 %464 }
 0x527   :  { %v3436_v56 = vmul.f32 %v465_v55, %v449_v46 }
 0x529   :  { %542 = vrot.lane.b32.xlu1 %v3436_v56, %s3246_s7 }
 0x59b   :  { %v543_v61 = vpop.permute.xlu1 %542 }
 0x59c   :  { %2911 = vmatmul.mubr.msk.f32.vlgmr.msra.gmra.mxu0 %vm199_vm2, %v543_v61 }
 0x59d   :  { %2925 = vmatpush3.msra.mxu0 %v3343_v5  ;;  %2932 = vmatprep.mubr.msk.f32.mxu0 %vm3244_vm0, %v3243_v0 }
 0x59e   :  { %2926 = vmatprep.subr.mxu0 %v3243_v0 }
 0x59f   :  { %2927 = vmatpush3.msra.mxu0 %v3345_v6 }
 0x5a0   :  { %2928 = vmatprep.subr.mxu0 %v3243_v0 }
 0x5a1   :  { %2929 = vmatpush3.msra.mxu0 %v3352_v8 }
 0x5a2   :  { %2930 = vmatprep.subr.mxu0 %v3243_v0 }
 0x5a3   :  { %2931 = vmatpush3.msra.mxu0 %v3359_v10 }
 0x5a4   :  { %2946 = vmatprep.subr.mxu0 %v3243_v0 }
 0x65c   :  { %v612_v63 = vpop.f32.mrf.mxu0 }
 0x65d   :  { %v616_v1 = vadd.f32 %v612_v63, %v541_v62 }
 0x65e   :  { %v2912_v2 = vpop.f32.mrf.mxu0 }
 0x65f   :  { %3113 = vtanh.f32 %v616_v1  ;;  %v617_v4 = vmul.f32 0.5, %v616_v1 }
 0x661   :  { %3115 = vtanh.f32 %v617_v4 }
 0x66c   :  { %v3114_v3 = vpop.eup %3113 }
 0x66d   :  { %624 = vrot.lane.b32.xlu0 %v3114_v3, %s3245_s21 }
 0x66e   :  { %v3116_v7 = vpop.eup %3115 }
 0x66f   :  { %v619_v9 = vmul.f32 0.5, %v3116_v7 }
 0x671   :  { %v620_v11 = vadd.f32 0.5, %v619_v9 }
 0x673   :  { %v622_v14 = vmul.f32 %v620_v11, %v461_v51 }
 0x6df   :  { %v625_v12 = vpop.permute.xlu0 %624 }
 0x6e0   :  { %v627_v13 = vmul.f32 %v625_v12, %v620_v11 }
 0x6e2   :  { %629 = vrot.lane.b32.xlu1 %v627_v13, %s3246_s7 }
 0x754   :  { %v630_v15 = vpop.permute.xlu1 %629 }
 0x755   :  { %v632_v16 = vadd.f32 %v630_v15, %v622_v14  ;;  %v1225_v14 = vld [vmem:[#allocation2 + $0x18] sm:$0xf] }
 0x757   :  { %3117 = vtanh.f32 %v632_v16 }
 0x764   :  { %v3118_v17 = vpop.eup %3117 }
 0x765   :  { %635 = vrot.lane.b32.xlu0 %v3118_v17, %s3245_s21 }
 0x7d7   :  { %v636_v18 = vpop.permute.xlu0 %635 }
 0x7d8   :  { %v3456_v19 = vmul.f32 %v636_v18, %v620_v11 }
 0x7da   :  { %713 = vrot.lane.b32.xlu1 %v3456_v19, %s3246_s7 }
 0x84c   :  { %v714_v20 = vpop.permute.xlu1 %713 }
 0x84d   :  { %2922 = vmatmul.mubr.msk.f32.vlgmr.msra.gmra.mxu1 %vm199_vm2, %v714_v20 }
 0x84e   :  { %2936 = vmatpush3.msra.mxu1 %v3343_v5  ;;  %2943 = vmatprep.mubr.msk.f32.mxu1 %vm3244_vm0, %v3243_v0 }
 0x84f   :  { %2937 = vmatprep.subr.mxu1 %v3243_v0 }
 0x850   :  { %2938 = vmatpush3.msra.mxu1 %v3345_v6 }
 0x851   :  { %2939 = vmatprep.subr.mxu1 %v3243_v0 }
 0x852   :  { %2940 = vmatpush3.msra.mxu1 %v3352_v8 }
 0x853   :  { %2941 = vmatprep.subr.mxu1 %v3243_v0 }
 0x854   :  { %2942 = vmatpush3.msra.mxu1 %v3359_v10 }
 0x855   :  { %2957 = vmatprep.subr.mxu1 %v3243_v0 }
 0x90d   :  { %v783_v22 = vpop.f32.mrf.mxu1 }
 0x90e   :  { %v787_v23 = vadd.f32 %v783_v22, %v712_v21 }
 0x90f   :  { %v2923_v24 = vpop.f32.mrf.mxu1 }
 0x910   :  { %3119 = vtanh.f32 %v787_v23  ;;  %v788_v26 = vmul.f32 0.5, %v787_v23 }
 0x912   :  { %3121 = vtanh.f32 %v788_v26 }
 0x91d   :  { %v3120_v25 = vpop.eup %3119 }
 0x91e   :  { %795 = vrot.lane.b32.xlu0 %v3120_v25, %s3245_s21 }
 0x91f   :  { %v3122_v27 = vpop.eup %3121 }
 0x920   :  { %v790_v28 = vmul.f32 0.5, %v3122_v27 }
 0x922   :  { %v791_v29 = vadd.f32 0.5, %v790_v28 }
 0x924   :  { %v793_v32 = vmul.f32 %v791_v29, %v632_v16 }
 0x990   :  { %v796_v30 = vpop.permute.xlu0 %795 }
 0x991   :  { %v798_v31 = vmul.f32 %v796_v30, %v791_v29 }
 0x993   :  { %800 = vrot.lane.b32.xlu1 %v798_v31, %s3246_s7 }
 0xa05   :  { %v801_v33 = vpop.permute.xlu1 %800 }
 0xa06   :  { %v803_v34 = vadd.f32 %v801_v33, %v793_v32  ;;  %v3247_v33 = vmov 1966171168  }
 0xa08   :  { %3123 = vtanh.f32 %v803_v34 }
 0xa15   :  { %v3124_v35 = vpop.eup %3123 }
 0xa16   :  { %806 = vrot.lane.b32.xlu0 %v3124_v35, %s3245_s21  ;;  %v300_v35 = vlaneseq }
 0xa88   :  { %v807_v37 = vpop.permute.xlu0 %806 }
 0xa89   :  { %v3474_v38 = vmul.f32 %v807_v37, %v791_v29  ;;  %v1396_v37 = vld [vmem:[#allocation2 + $0x1c] sm:$0xf] }
 0xa8b   :  { %884 = vrot.lane.b32.xlu1 %v3474_v38, %s3246_s7 }
 0xafd   :  { %v885_v39 = vpop.permute.xlu1 %884 }
 0xafe   :  { %2933 = vmatmul.mubr.msk.f32.vlgmr.msra.gmra.mxu0 %vm199_vm2, %v885_v39 }
 0xaff   :  { %2947 = vmatpush3.msra.mxu0 %v3343_v5  ;;  %2954 = vmatprep.mubr.msk.f32.mxu0 %vm3244_vm0, %v3243_v0 }
 0xb00   :  { %2948 = vmatprep.subr.mxu0 %v3243_v0 }
 0xb01   :  { %2949 = vmatpush3.msra.mxu0 %v3345_v6 }
 0xb02   :  { %2950 = vmatprep.subr.mxu0 %v3243_v0 }
 0xb03   :  { %2951 = vmatpush3.msra.mxu0 %v3352_v8 }
 0xb04   :  { %2952 = vmatprep.subr.mxu0 %v3243_v0 }
 0xb05   :  { %2953 = vmatpush3.msra.mxu0 %v3359_v10 }
 0xbbe   :  { %v954_v41 = vpop.f32.mrf.mxu0 }
 0xbbf   :  { %v958_v42 = vadd.f32 %v954_v41, %v883_v40 }
 0xbc0   :  { %v2934_v43 = vpop.f32.mrf.mxu0 }
 0xbc1   :  { %3125 = vtanh.f32 %v958_v42  ;;  %v959_v45 = vmul.f32 0.5, %v958_v42  ;;  %v301_v43 = vshrl.u32 %v300_v35, 7 }
 0xbc3   :  { %3127 = vtanh.f32 %v959_v45 }
 0xbce   :  { %v3126_v44 = vpop.eup %3125 }
 0xbcf   :  { %966 = vrot.lane.b32.xlu0 %v3126_v44, %s3245_s21 }
 0xbd0   :  { %v3128_v46 = vpop.eup %3127 }
 0xbd1   :  { %v961_v47 = vmul.f32 0.5, %v3128_v46  ;;  %v3525_v46 = vsub.s32 0, %v301_v43 }
 0xbd3   :  { %v962_v48 = vadd.f32 0.5, %v961_v47 }
 0xbd5   :  { %v964_v51 = vmul.f32 %v962_v48, %v803_v34  ;;  %v298_v34 = vunpack.c.l.s4 %v3247_v33 }
 0xbd7   :  { %v299_v42 = vunpack.c.0.s8 %v298_v34 }
 0xbd9   :  { %v3521_v44 = vsub.s32 %v299_v42, %v301_v43 }
 0xbdb   :  { %v303_v45 = vrot.slane %v3408_v36, %v3521_v44 }
 0xbdd   :  { %v3528_v47 = vrot.slane %v303_v45, %v3521_v44 }
 0xbdf   :  { %v3540_v36 = vrot.slane %v3528_v47, %v3525_v46 }
 0xc41   :  { %v967_v49 = vpop.permute.xlu0 %966 }
 0xc42   :  { %v969_v50 = vmul.f32 %v967_v49, %v962_v48 }
 0xc44   :  { %971 = vrot.lane.b32.xlu1 %v969_v50, %s3246_s7 }
 0xcb6   :  { %v972_v52 = vpop.permute.xlu1 %971 }
 0xcb7   :  { %v974_v53 = vadd.f32 %v972_v52, %v964_v51  ;;  %v646_v51 = vrot.slane %v3456_v19, %v3521_v44 }
 0xcb9   :  { %3129 = vtanh.f32 %v974_v53  ;;  %v3545_v52 = vrot.slane %v646_v51, %v3521_v44 }
 0xcc6   :  { %v3130_v54 = vpop.eup %3129 }
 0xcc7   :  { %977 = vrot.lane.b32.xlu0 %v3130_v54, %s3245_s21 }
 0xd39   :  { %v978_v55 = vpop.permute.xlu0 %977 }
 0xd3a   :  { %v3491_v57 = vmul.f32 %v978_v55, %v962_v48  ;;  %v475_v48 = vrot.slane %v3436_v56, %v3521_v44  ;;  %v817_v56 = vrot.slane %v3474_v38, %v3521_v44  ;;  %v667_v55 = vrot.slane %v3545_v52, %v3525_v46 }
 0xd3c   :  { %1055 = vrot.lane.b32.xlu1 %v3491_v57, %s3246_s7  ;;  %v3534_v50 = vrot.slane %v475_v48, %v3521_v44  ;;  %v3553_v19 = vrot.slane %v817_v56, %v3521_v44  ;;  %v988_v54 = vrot.slane %v3491_v57, %v3521_v44 }
 0xdae   :  { %v1056_v58 = vpop.permute.xlu1 %1055 }
 0xdaf   :  { %2944 = vmatmul.mubr.msk.f32.vlgmr.msra.gmra.mxu1 %vm199_vm2, %v1056_v58  ;;  %v3561_v58 = vrot.slane %v988_v54, %v3521_v44 }
 0xdb0   :  { %2958 = vmatpush3.msra.mxu1 %v3343_v5  ;;  %2965 = vmatprep.mubr.msk.f32.mxu1 %vm3244_vm0, %v3243_v0 }
 0xdb1   :  { %2959 = vmatprep.subr.mxu1 %v3243_v0 }
 0xdb2   :  { %2960 = vmatpush3.msra.mxu1 %v3345_v6 }
 0xdb3   :  { %2961 = vmatprep.subr.mxu1 %v3243_v0 }
 0xdb4   :  { %2962 = vmatpush3.msra.mxu1 %v3352_v8 }
 0xdb5   :  { %2963 = vmatprep.subr.mxu1 %v3243_v0 }
 0xdb6   :  { %2964 = vmatpush3.msra.mxu1 %v3359_v10 }
 0xe6f   :  { %v1125_v60 = vpop.f32.mrf.mxu1 }
 0xe70   :  { %v1129_v61 = vadd.f32 %v1125_v60, %v1054_v59  ;;  %v838_v59 = vrot.slane %v3553_v19, %v3525_v46 }
 0xe71   :  { %v2945_v62 = vpop.f32.mrf.mxu1 }
 0xe72   :  { %3131 = vtanh.f32 %v1129_v61  ;;  %v1130_v63 = vmul.f32 0.5, %v1129_v61  ;;  %v1009_v61 = vrot.slane %v3561_v58, %v3525_v46  ;;  %v304_v62 = vcombine.high %v303_v45, %v303_v45 }
 0xe74   :  { %3133 = vtanh.f32 %v1130_v63 }
 0xe7f   :  { %v3132_v5 = vpop.eup %3131 }
 0xe80   :  { %1137 = vrot.lane.b32.xlu0 %v3132_v5, %s3245_s21 }
 0xe81   :  { %v3134_v1 = vpop.eup %3133 }
 0xe82   :  { %v1132_v6 = vmul.f32 0.5, %v3134_v1  ;;  %v476_v1 = vcombine.high %v475_v48, %v475_v48 }
 0xe84   :  { %v1133_v2 = vadd.f32 0.5, %v1132_v6 }
 0xe86   :  { %v1135_v8 = vmul.f32 %v1133_v2, %v974_v53  ;;  %v496_v53 = vrot.slane %v3534_v50, %v3525_v46 }
 0xef2   :  { %v1138_v3 = vpop.permute.xlu0 %1137 }
 0xef3   :  { %v1140_v4 = vmul.f32 %v1138_v3, %v1133_v2  ;;  %v647_v3 = vcombine.high %v646_v51, %v646_v51  ;;  %v319_v51 = vcombine.high %v3528_v47, %v3528_v47  ;;  %v833_v47 = vcombine.high %v3553_v19, %v3553_v19 }
 0xef5   :  { %1142 = vrot.lane.b32.xlu1 %v1140_v4, %s3246_s7 }
 0xf67   :  { %v1143_v7 = vpop.permute.xlu1 %1142 }
 0xf68   :  { %v1145_v10 = vadd.f32 %v1143_v7, %v1135_v8  ;;  %v3589_v8 = vrot.slane %v476_v1, %v3521_v44  ;;  %v818_v7 = vcombine.high %v817_v56, %v817_v56  ;;  %v491_v56 = vcombine.high %v3534_v50, %v3534_v50 }
 0xf69   :  { %v1004_v50 = vcombine.high %v3561_v58, %v3561_v58 }
 0xf6a   :  { %3135 = vtanh.f32 %v1145_v10 }
 0xf77   :  { %v3136_v9 = vpop.eup %3135 }
 0xf78   :  { %1148 = vrot.lane.b32.xlu0 %v3136_v9, %s3245_s21  ;;  %v3595_v9 = vrot.slane %v647_v3, %v3521_v44 }
 0xfea   :  { %v1149_v11 = vpop.permute.xlu0 %1148 }
 0xfeb   :  { %v1151_v12 = vmul.f32 %v1149_v11, %v1133_v2  ;;  %v3583_v2 = vrot.slane %v304_v62, %v3521_v44  ;;  %v989_v11 = vcombine.high %v988_v54, %v988_v54  ;;  %v662_v54 = vcombine.high %v3545_v52, %v3545_v52 }
 0xfed   :  { %1226 = vrot.lane.b32.xlu1 %v1151_v12, %s3246_s7  ;;  %v1159_v38 = vrot.slane %v1151_v12, %v3521_v44  ;;  %v328_v4 = vrot.slane %v3583_v2, %v3525_v46  ;;  %v671_v12 = vrot.slane %v3595_v9, %v3525_v46  ;;  %v320_v58 = vcombine.high %v3583_v2, %v3583_v2 }
 0xfef   :  { %v3568_v60 = vrot.slane %v1159_v38, %v3521_v44  ;;  %v336_v62 = vrot.slane %v320_v58, %v3525_v46 }
 0xff1   :  { %v1180_v63 = vrot.slane %v3568_v60, %v3525_v46  ;;  %v1175_v52 = vcombine.high %v3568_v60, %v3568_v60  ;;  %v492_v60 = vcombine.high %v3589_v8, %v3589_v8 }
0x105f   :  { %v1227_v13 = vpop.permute.xlu1 %1226 }
0x1060   :  { %2955 = vmatmul.mubr.msk.f32.vlgmr.msra.gmra.mxu0 %vm199_vm2, %v1227_v13  ;;  %v3601_v13 = vrot.slane %v818_v7, %v3521_v44 }
0x1120   :  { %v1296_v15 = vpop.f32.mrf.mxu0 }
0x1121   :  { %v1300_v16 = vadd.f32 %v1296_v15, %v1225_v14  ;;  %v1160_v14 = vcombine.high %v1159_v38, %v1159_v38  ;;  %v842_v15 = vrot.slane %v3601_v13, %v3525_v46  ;;  %v846_v38 = vrot.slane %v833_v47, %v3525_v46  ;;  %v1577_v47 = vld [vmem:[#allocation8 + $0x10] sm:$0xff] }
0x1122   :  { %v2956_v17 = vpop.f32.mrf.mxu0 }
0x1123   :  { %3137 = vtanh.f32 %v1300_v16  ;;  %v1301_v20 = vmul.f32 0.5, %v1300_v16  ;;  %v3607_v16 = vrot.slane %v989_v11, %v3521_v44 }
0x1125   :  { %3139 = vtanh.f32 %v1301_v20  ;;  %v3613_v20 = vrot.slane %v1160_v14, %v3521_v44  ;;  %v1005_v3 = vcombine.high %v3607_v16, %v3607_v16 }
0x1130   :  { %v3138_v18 = vpop.eup %3137 }
0x1131   :  { %1308 = vrot.lane.b32.xlu0 %v3138_v18, %s3245_s21  ;;  %v1013_v18 = vrot.slane %v3607_v16, %v3525_v46 }
0x1132   :  { %v3140_v21 = vpop.eup %3139 }
0x1133   :  { %v1303_v22 = vmul.f32 0.5, %v3140_v21  ;;  %v1184_v21 = vrot.slane %v3613_v20, %v3525_v46 }
0x1135   :  { %v1304_v23 = vadd.f32 0.5, %v1303_v22 }
0x1137   :  { %v1306_v26 = vmul.f32 %v1304_v23, %v1145_v10  ;;  %v500_v10 = vrot.slane %v3589_v8, %v3525_v46  ;;  %v1176_v8 = vcombine.high %v3613_v20, %v3613_v20 }
0x1139   :  { %v1192_v7 = vrot.slane %v1176_v8, %v3525_v46 }
0x11a3   :  { %v1309_v24 = vpop.permute.xlu0 %1308 }
0x11a4   :  { %v1311_v25 = vmul.f32 %v1309_v24, %v1304_v23 }
0x11a6   :  { %1313 = vrot.lane.b32.xlu1 %v1311_v25, %s3246_s7 }
0x1218   :  { %v1314_v27 = vpop.permute.xlu1 %1313 }
0x1219   :  { %v3512_v28 = vadd.f32 %v1314_v27, %v1306_v26 }
0x121b   :  { %3141 = vtanh.f32 %v3512_v28 }
0x1228   :  { %v3142_v29 = vpop.eup %3141 }
0x1229   :  { %1319 = vrot.lane.b32.xlu0 %v3142_v29, %s3245_s21 }
0x129b   :  { %v1320_v30 = vpop.permute.xlu0 %1319 }
0x129c   :  { %v1322_v31 = vmul.f32 %v1320_v30, %v1304_v23 }
0x129e   :  { %1397 = vrot.lane.b32.xlu1 %v1322_v31, %s3246_s7  ;;  %v1330_v57 = vrot.slane %v1322_v31, %v3521_v44 }
0x12a0   :  { %v3575_v5 = vrot.slane %v1330_v57, %v3521_v44  ;;  %v1331_v17 = vcombine.high %v1330_v57, %v1330_v57  ;;  %v1188_v57 = vrot.slane %v1175_v52, %v3525_v46 }
0x12a2   :  { %v1351_v6 = vrot.slane %v3575_v5, %v3525_v46  ;;  %v3619_v22 = vrot.slane %v1331_v17, %v3521_v44  ;;  %v1346_v19 = vcombine.high %v3575_v5, %v3575_v5  ;;  %v663_v5 = vcombine.high %v3595_v9, %v3595_v9 }
0x12a4   :  { %v1355_v23 = vrot.slane %v3619_v22, %v3525_v46  ;;  %v679_v1 = vrot.slane %v663_v5, %v3525_v46 }
0x1310   :  { %v1398_v32 = vpop.permute.xlu1 %1397 }
0x1311   :  { %2966 = vmatmul.mubr.msk.f32.vlgmr.msra.gmra.mxu1 %vm199_vm2, %v1398_v32 }
0x13d1   :  { %v1467_v39 = vpop.f32.mrf.mxu1 }
0x13d2   :  { %v3518_v40 = vadd.f32 %v1467_v39, %v1396_v37 }
0x13d3   :  { %v2967_v41 = vpop.f32.mrf.mxu1 }
0x13d4   :  { %3143 = vtanh.f32 %v3518_v40  ;;  %v1472_v24 = vmul.f32 0.5, %v3518_v40 }
0x13d6   :  { %3145 = vtanh.f32 %v1472_v24 }
0x13e1   :  { %v3144_v49 = vpop.eup %3143 }
0x13e2   :  { %1479 = vrot.lane.b32.xlu0 %v3144_v49, %s3245_s21 }
0x13e3   :  { %v3146_v25 = vpop.eup %3145 }
0x13e4   :  { %v1474_v26 = vmul.f32 0.5, %v3146_v25 }
0x13e6   :  { %354 = vrot.lane.b32.xlu0 %v3540_v36, %s3248_s0  ;;  %v3626_v27 = vadd.f32 0.5, %v1474_v26 }
0x13e8   :  { %v1477_v11 = vmul.f32 %v3626_v27, %v3512_v28 }
0x13ea   :  { %525 = vrot.lane.b32.xlu0 %v496_v53, %s3248_s0 }
0x13ee   :  { %696 = vrot.lane.b32.xlu0 %v667_v55, %s3248_s0 }
0x13f2   :  { %867 = vrot.lane.b32.xlu0 %v838_v59, %s3248_s0 }
0x13f6   :  { %1038 = vrot.lane.b32.xlu0 %v1009_v61, %s3248_s0 }
0x13fa   :  { %1209 = vrot.lane.b32.xlu0 %v1180_v63, %s3248_s0 }
0x13fe   :  { %1380 = vrot.lane.b32.xlu0 %v1351_v6, %s3248_s0 }
0x1402   :  { %356 = vrot.lane.b32.xlu0 %v328_v4, %s3248_s0 }
0x1406   :  { %527 = vrot.lane.b32.xlu0 %v500_v10, %s3248_s0 }
0x140a   :  { %698 = vrot.lane.b32.xlu0 %v671_v12, %s3248_s0 }
0x140e   :  { %869 = vrot.lane.b32.xlu0 %v842_v15, %s3248_s0 }
0x1412   :  { %1040 = vrot.lane.b32.xlu0 %v1013_v18, %s3248_s0 }
0x1416   :  { %1211 = vrot.lane.b32.xlu0 %v1184_v21, %s3248_s0 }
0x141a   :  { %1382 = vrot.lane.b32.xlu0 %v1355_v23, %s3248_s0 }
0x1454   :  { %v1480_v29 = vpop.permute.xlu0 %1479 }
0x1455   :  { %v1482_v30 = vmul.f32 %v1480_v29, %v3626_v27 }
0x1457   :  { %1484 = vrot.lane.b32.xlu1 %v1482_v30, %s3246_s7 }
0x1458   :  { %v355_v31 = vpop.permute.xlu0 %354 }
0x1459   :  { %366 = vst.msk [vmem:[#allocation4 + $0x7] sm:$0x1] %vm349_vm3, %v355_v31 }
0x145b   :  { %337 = vrot.lane.b32.xlu1 %v3540_v36, %s3246_s7  ;;  %v332_v36 = vrot.slane %v319_v51, %v3525_v46 }
0x145c   :  { %v526_v32 = vpop.permute.xlu0 %525 }
0x145d   :  { %537 = vst.msk [vmem:[#allocation4 + $0x6] sm:$0x1] %vm349_vm3, %v526_v32 }
0x145f   :  { %509 = vrot.lane.b32.xlu1 %v496_v53, %s3246_s7  ;;  %v504_v53 = vrot.slane %v491_v56, %v3525_v46 }
0x1460   :  { %v697_v33 = vpop.permute.xlu0 %696 }
0x1461   :  { %708 = vst.msk [vmem:[#allocation4 + $0x5] sm:$0x1] %vm349_vm3, %v697_v33 }
0x1463   :  { %680 = vrot.lane.b32.xlu1 %v667_v55, %s3246_s7  ;;  %v675_v55 = vrot.slane %v662_v54, %v3525_v46  ;;  %v1576_v54 = vld [vmem:[#allocation8 + $0x8] sm:$0xff] }
0x1464   :  { %v868_v34 = vpop.permute.xlu0 %867  ;;  %2978 = vmatprep.subr.mxu1 %v1576_v54 }
0x1465   :  { %879 = vst.msk [vmem:[#allocation4 + $0x4] sm:$0x1] %vm349_vm3, %v868_v34  ;;  %2979 = vmatpush3.msra.mxu1 %v1576_v54 }
0x1467   :  { %851 = vrot.lane.b32.xlu1 %v838_v59, %s3246_s7  ;;  %v1017_v59 = vrot.slane %v1004_v50, %v3525_v46 }
0x1468   :  { %v1039_v35 = vpop.permute.xlu0 %1038 }
0x1469   :  { %1050 = vst.msk [vmem:[#allocation4 + $0x3] sm:$0x1] %vm349_vm3, %v1039_v35 }
0x146b   :  { %1022 = vrot.lane.b32.xlu1 %v1009_v61, %s3246_s7  ;;  %v1359_v61 = vrot.slane %v1346_v19, %v3525_v46 }
0x146c   :  { %v1210_v37 = vpop.permute.xlu0 %1209 }
0x146d   :  { %1221 = vst.msk [vmem:[#allocation4 + $0x2] sm:$0x1] %vm349_vm3, %v1210_v37 }
0x146f   :  { %1193 = vrot.lane.b32.xlu1 %v1180_v63, %s3246_s7  ;;  %v508_v63 = vrot.slane %v492_v60, %v3525_v46 }
0x1470   :  { %v1381_v39 = vpop.permute.xlu0 %1380 }
0x1471   :  { %1392 = vst.msk [vmem:[#allocation4 + $0x1] sm:$0x1] %vm349_vm3, %v1381_v39 }
0x1473   :  { %1364 = vrot.lane.b32.xlu1 %v1351_v6, %s3246_s7  ;;  %v834_v6 = vcombine.high %v3601_v13, %v3601_v13 }
0x1474   :  { %v357_v40 = vpop.permute.xlu0 %356 }
0x1475   :  { %367 = vst.msk [vmem:[#allocation4 + $0xf] sm:$0x1] %vm349_vm3, %v357_v40  ;;  %v850_v2 = vrot.slane %v834_v6, %v3525_v46 }
0x1477   :  { %339 = vrot.lane.b32.xlu1 %v328_v4, %s3246_s7  ;;  %v1021_v4 = vrot.slane %v1005_v3, %v3525_v46 }
0x1478   :  { %v528_v41 = vpop.permute.xlu0 %527 }
0x1479   :  { %538 = vst.msk [vmem:[#allocation4 + $0xe] sm:$0x1] %vm349_vm3, %v528_v41 }
0x147b   :  { %511 = vrot.lane.b32.xlu1 %v500_v10, %s3246_s7  ;;  %v1347_v10 = vcombine.high %v3619_v22, %v3619_v22 }
0x147c   :  { %v699_v42 = vpop.permute.xlu0 %698 }
0x147d   :  { %709 = vst.msk [vmem:[#allocation4 + $0xd] sm:$0x1] %vm349_vm3, %v699_v42  ;;  %v1363_v9 = vrot.slane %v1347_v10, %v3525_v46 }
0x147f   :  { %682 = vrot.lane.b32.xlu1 %v671_v12, %s3246_s7 }
0x1480   :  { %v870_v43 = vpop.permute.xlu0 %869 }
0x1481   :  { %880 = vst.msk [vmem:[#allocation4 + $0xc] sm:$0x1] %vm349_vm3, %v870_v43 }
0x1483   :  { %853 = vrot.lane.b32.xlu1 %v842_v15, %s3246_s7 }
0x1484   :  { %v1041_v45 = vpop.permute.xlu0 %1040 }
0x1485   :  { %1051 = vst.msk [vmem:[#allocation4 + $0xb] sm:$0x1] %vm349_vm3, %v1041_v45 }
0x1487   :  { %1024 = vrot.lane.b32.xlu1 %v1013_v18, %s3246_s7 }
0x1488   :  { %v1212_v48 = vpop.permute.xlu0 %1211 }
0x1489   :  { %1222 = vst.msk [vmem:[#allocation4 + $0xa] sm:$0x1] %vm349_vm3, %v1212_v48 }
0x148b   :  { %1195 = vrot.lane.b32.xlu1 %v1184_v21, %s3246_s7 }
0x148c   :  { %v1383_v49 = vpop.permute.xlu0 %1382 }
0x148d   :  { %1393 = vst.msk [vmem:[#allocation4 + $0x9] sm:$0x1] %vm349_vm3, %v1383_v49 }
0x148f   :  { %1366 = vrot.lane.b32.xlu1 %v1355_v23, %s3246_s7 }
0x1493   :  { %341 = vrot.lane.b32.xlu1 %v332_v36, %s3246_s7 }
0x1497   :  { %513 = vrot.lane.b32.xlu1 %v504_v53, %s3246_s7 }
0x149b   :  { %684 = vrot.lane.b32.xlu1 %v675_v55, %s3246_s7 }
0x149f   :  { %855 = vrot.lane.b32.xlu1 %v846_v38, %s3246_s7 }
0x14a3   :  { %1026 = vrot.lane.b32.xlu1 %v1017_v59, %s3246_s7 }
0x14a7   :  { %1197 = vrot.lane.b32.xlu1 %v1188_v57, %s3246_s7 }
0x14ab   :  { %1368 = vrot.lane.b32.xlu1 %v1359_v61, %s3246_s7 }
0x14af   :  { %343 = vrot.lane.b32.xlu1 %v336_v62, %s3246_s7 }
0x14b3   :  { %515 = vrot.lane.b32.xlu1 %v508_v63, %s3246_s7 }
0x14b7   :  { %686 = vrot.lane.b32.xlu1 %v679_v1, %s3246_s7 }
0x14bb   :  { %857 = vrot.lane.b32.xlu1 %v850_v2, %s3246_s7 }
0x14bf   :  { %1028 = vrot.lane.b32.xlu1 %v1021_v4, %s3246_s7 }
0x14c3   :  { %1199 = vrot.lane.b32.xlu1 %v1192_v7, %s3246_s7 }
0x14c7   :  { %1370 = vrot.lane.b32.xlu1 %v1363_v9, %s3246_s7 }
0x14c9   :  { %v1485_v12 = vpop.permute.xlu1 %1484 }
0x14ca   :  { %v1487_v13 = vadd.f32 %v1485_v12, %v1477_v11 }
0x14cc   :  { %3147 = vtanh.f32 %v1487_v13 }
0x14cd   :  { %v338_v14 = vpop.permute.xlu1 %337 }
0x14ce   :  { %350 = vst.msk [vmem:[#allocation3] sm:$0x1] %vm349_vm3, %v338_v14 }
0x14d1   :  { %v510_v15 = vpop.permute.xlu1 %509 }
0x14d2   :  { %521 = vst.msk [vmem:[#allocation3 + $0x1] sm:$0x1] %vm349_vm3, %v510_v15 }
0x14d5   :  { %v681_v16 = vpop.permute.xlu1 %680 }
0x14d6   :  { %692 = vst.msk [vmem:[#allocation3 + $0x2] sm:$0x1] %vm349_vm3, %v681_v16 }
0x14d9   :  { %v3148_v17 = vpop.eup %3147  ;;  %v852_v18 = vpop.permute.xlu1 %851 }
0x14da   :  { %863 = vst.msk [vmem:[#allocation3 + $0x3] sm:$0x1] %vm349_vm3, %v852_v18  ;;  %1490 = vrot.lane.b32.xlu0 %v3148_v17, %s3245_s21 }
0x14dd   :  { %v1023_v20 = vpop.permute.xlu1 %1022 }
0x14de   :  { %1034 = vst.msk [vmem:[#allocation3 + $0x4] sm:$0x1] %vm349_vm3, %v1023_v20  ;;  %358 = vrot.lane.b32.xlu0 %v332_v36, %s3248_s0 }
0x14e1   :  { %v1194_v28 = vpop.permute.xlu1 %1193 }
0x14e2   :  { %1205 = vst.msk [vmem:[#allocation3 + $0x5] sm:$0x1] %vm349_vm3, %v1194_v28  ;;  %529 = vrot.lane.b32.xlu0 %v504_v53, %s3248_s0  ;;  %v1578_v53 = vld [vmem:[#allocation8 + $0x18] sm:$0xff] }
0x14e3   :  { %2968 = vmatprep.subr.mxu0 %v1578_v53 }
0x14e4   :  { %2969 = vmatpush3.msra.mxu0 %v1578_v53 }
0x14e5   :  { %v1365_v21 = vpop.permute.xlu1 %1364  ;;  %2970 = vmatprep.subr.mxu0 %v1577_v47 }
0x14e6   :  { %1376 = vst.msk [vmem:[#allocation3 + $0x6] sm:$0x1] %vm349_vm3, %v1365_v21  ;;  %700 = vrot.lane.b32.xlu0 %v675_v55, %s3248_s0  ;;  %2971 = vmatpush3.msra.mxu0 %v1577_v47 }
0x14e7   :  { %2988 = vmatprep.subr.mxu0 %v3243_v0 }
0x14e9   :  { %v340_v22 = vpop.permute.xlu1 %339 }
0x14ea   :  { %351 = vst.msk [vmem:[#allocation3 + $0x8] sm:$0x1] %vm349_vm3, %v340_v22  ;;  %871 = vrot.lane.b32.xlu0 %v846_v38, %s3248_s0  ;;  %v1575_v38 = vld [vmem:[#allocation8] sm:$0xff] }
0x14eb   :  { %2980 = vmatprep.subr.mxu1 %v1575_v38 }
0x14ec   :  { %2981 = vmatpush3.msra.mxu1 %v1575_v38 }
0x14ed   :  { %v512_v23 = vpop.permute.xlu1 %511  ;;  %2999 = vmatprep.subr.mxu1 %v3243_v0 }
0x14ee   :  { %522 = vst.msk [vmem:[#allocation3 + $0x9] sm:$0x1] %vm349_vm3, %v512_v23  ;;  %1042 = vrot.lane.b32.xlu0 %v1017_v59, %s3248_s0 }
0x14f1   :  { %v683_v24 = vpop.permute.xlu1 %682 }
0x14f2   :  { %693 = vst.msk [vmem:[#allocation3 + $0xa] sm:$0x1] %vm349_vm3, %v683_v24  ;;  %1213 = vrot.lane.b32.xlu0 %v1188_v57, %s3248_s0 }
0x14f5   :  { %v854_v25 = vpop.permute.xlu1 %853 }
0x14f6   :  { %864 = vst.msk [vmem:[#allocation3 + $0xb] sm:$0x1] %vm349_vm3, %v854_v25  ;;  %1384 = vrot.lane.b32.xlu0 %v1359_v61, %s3248_s0 }
0x14f9   :  { %v1025_v26 = vpop.permute.xlu1 %1024 }
0x14fa   :  { %1035 = vst.msk [vmem:[#allocation3 + $0xc] sm:$0x1] %vm349_vm3, %v1025_v26  ;;  %360 = vrot.lane.b32.xlu0 %v336_v62, %s3248_s0 }
0x14fd   :  { %v1196_v29 = vpop.permute.xlu1 %1195 }
0x14fe   :  { %1206 = vst.msk [vmem:[#allocation3 + $0xd] sm:$0x1] %vm349_vm3, %v1196_v29  ;;  %531 = vrot.lane.b32.xlu0 %v508_v63, %s3248_s0 }
0x1501   :  { %v1367_v30 = vpop.permute.xlu1 %1366 }
0x1502   :  { %1377 = vst.msk [vmem:[#allocation3 + $0xe] sm:$0x1] %vm349_vm3, %v1367_v30  ;;  %702 = vrot.lane.b32.xlu0 %v679_v1, %s3248_s0 }
0x1505   :  { %v342_v31 = vpop.permute.xlu1 %341 }
0x1506   :  { %352 = vst.msk [vmem:[#allocation3 + $0x10] sm:$0x1] %vm349_vm3, %v342_v31  ;;  %873 = vrot.lane.b32.xlu0 %v850_v2, %s3248_s0 }
0x1509   :  { %v514_v32 = vpop.permute.xlu1 %513 }
0x150a   :  { %523 = vst.msk [vmem:[#allocation3 + $0x11] sm:$0x1] %vm349_vm3, %v514_v32  ;;  %1044 = vrot.lane.b32.xlu0 %v1021_v4, %s3248_s0 }
0x150d   :  { %v685_v33 = vpop.permute.xlu1 %684 }
0x150e   :  { %694 = vst.msk [vmem:[#allocation3 + $0x12] sm:$0x1] %vm349_vm3, %v685_v33  ;;  %1215 = vrot.lane.b32.xlu0 %v1192_v7, %s3248_s0 }
0x1511   :  { %v856_v34 = vpop.permute.xlu1 %855 }
0x1512   :  { %865 = vst.msk [vmem:[#allocation3 + $0x13] sm:$0x1] %vm349_vm3, %v856_v34  ;;  %1386 = vrot.lane.b32.xlu0 %v1363_v9, %s3248_s0  ;;  %v2736_v34 = vld [vmem:[%s3979_s9] ss:$0 sm:$0xff] }
0x1515   :  { %v1027_v35 = vpop.permute.xlu1 %1026 }
0x1516   :  { %1036 = vst.msk [vmem:[#allocation3 + $0x14] sm:$0x1] %vm349_vm3, %v1027_v35 }
0x1519   :  { %v1198_v37 = vpop.permute.xlu1 %1197 }
0x151a   :  { %1207 = vst.msk [vmem:[#allocation3 + $0x15] sm:$0x1] %vm349_vm3, %v1198_v37 }
0x151d   :  { %v1369_v39 = vpop.permute.xlu1 %1368 }
0x151e   :  { %1378 = vst.msk [vmem:[#allocation3 + $0x16] sm:$0x1] %vm349_vm3, %v1369_v39 }
0x1521   :  { %v344_v40 = vpop.permute.xlu1 %343 }
0x1522   :  { %353 = vst.msk [vmem:[#allocation3 + $0x18] sm:$0x1] %vm349_vm3, %v344_v40 }
0x1525   :  { %v516_v41 = vpop.permute.xlu1 %515 }
0x1526   :  { %524 = vst.msk [vmem:[#allocation3 + $0x19] sm:$0x1] %vm349_vm3, %v516_v41 }
0x1529   :  { %v687_v42 = vpop.permute.xlu1 %686 }
0x152a   :  { %695 = vst.msk [vmem:[#allocation3 + $0x1a] sm:$0x1] %vm349_vm3, %v687_v42 }
0x152d   :  { %v858_v43 = vpop.permute.xlu1 %857 }
0x152e   :  { %866 = vst.msk [vmem:[#allocation3 + $0x1b] sm:$0x1] %vm349_vm3, %v858_v43 }
0x1531   :  { %v1029_v45 = vpop.permute.xlu1 %1028 }
0x1532   :  { %1037 = vst.msk [vmem:[#allocation3 + $0x1c] sm:$0x1] %vm349_vm3, %v1029_v45 }
0x1535   :  { %v1200_v48 = vpop.permute.xlu1 %1199 }
0x1536   :  { %1208 = vst.msk [vmem:[#allocation3 + $0x1d] sm:$0x1] %vm349_vm3, %v1200_v48 }
0x1539   :  { %v1371_v49 = vpop.permute.xlu1 %1370 }
0x153a   :  { %1379 = vst.msk [vmem:[#allocation3 + $0x1e] sm:$0x1] %vm349_vm3, %v1371_v49 }
0x154c   :  { %v1491_v51 = vpop.permute.xlu0 %1490 }
0x154d   :  { %v1493_v36 = vmul.f32 %v1491_v51, %v3626_v27 }
0x154f   :  { %v1501_v56 = vrot.slane %v1493_v36, %v3521_v44 }
0x1550   :  { %v359_v55 = vpop.permute.xlu0 %358 }
0x1551   :  { %v1502_v50 = vcombine.high %v1501_v56, %v1501_v56  ;;  %v1509_v59 = vrot.slane %v1501_v56, %v3521_v44  ;;  %368 = vst.msk [vmem:[#allocation4 + $0x17] sm:$0x1] %vm349_vm3, %v359_v55  ;;  %v2737_v56 = vld [vmem:[%s3980_s10] ss:$0 sm:$0xff] }
0x1553   :  { %v1522_v27 = vrot.slane %v1509_v59, %v3525_v46  ;;  %v1516_v52 = vrot.slane %v1502_v50, %v3521_v44  ;;  %v1517_v61 = vcombine.high %v1509_v59, %v1509_v59 }
0x1554   :  { %v530_v57 = vpop.permute.xlu0 %529 }
0x1555   :  { %539 = vst.msk [vmem:[#allocation4 + $0x16] sm:$0x1] %vm349_vm3, %v530_v57  ;;  %1551 = vrot.lane.b32.xlu0 %v1522_v27, %s3248_s0  ;;  %1535 = vrot.lane.b32.xlu1 %v1522_v27, %s3246_s7  ;;  %v1526_v19 = vrot.slane %v1516_v52, %v3525_v46  ;;  %v1530_v44 = vrot.slane %v1517_v61, %v3525_v46 }
0x1556   :  { %v1518_v62 = vcombine.high %v1516_v52, %v1516_v52 }
0x1558   :  { %v701_v58 = vpop.permute.xlu0 %700  ;;  %v1534_v63 = vrot.slane %v1518_v62, %v3525_v46 }
0x1559   :  { %710 = vst.msk [vmem:[#allocation4 + $0x15] sm:$0x1] %vm349_vm3, %v701_v58  ;;  %1553 = vrot.lane.b32.xlu0 %v1526_v19, %s3248_s0  ;;  %1537 = vrot.lane.b32.xlu1 %v1526_v19, %s3246_s7  ;;  %v3249_v19 = vmov 0  }
0x155a   :  { %3099 = vset.pattern.permute.xlu0 %v3249_v19  ;;  %3100 = vset.pattern.permute.xlu1 %v3249_v19 }
0x155c   :  { %v872_v60 = vpop.permute.xlu0 %871 }
0x155d   :  { %881 = vst.msk [vmem:[#allocation4 + $0x14] sm:$0x1] %vm349_vm3, %v872_v60  ;;  %1555 = vrot.lane.b32.xlu0 %v1530_v44, %s3248_s0  ;;  %1539 = vrot.lane.b32.xlu1 %v1530_v44, %s3246_s7 }
0x1560   :  { %v1043_v5 = vpop.permute.xlu0 %1042 }
0x1561   :  { %1052 = vst.msk [vmem:[#allocation4 + $0x13] sm:$0x1] %vm349_vm3, %v1043_v5  ;;  %1557 = vrot.lane.b32.xlu0 %v1534_v63, %s3248_s0  ;;  %1541 = vrot.lane.b32.xlu1 %v1534_v63, %s3246_s7 }
0x1564   :  { %v1214_v1 = vpop.permute.xlu0 %1213 }
0x1565   :  { %1223 = vst.msk [vmem:[#allocation4 + $0x12] sm:$0x1] %vm349_vm3, %v1214_v1 }
0x1568   :  { %v1385_v6 = vpop.permute.xlu0 %1384 }
0x1569   :  { %1394 = vst.msk [vmem:[#allocation4 + $0x11] sm:$0x1] %vm349_vm3, %v1385_v6  ;;  %v1823_v6 = vld [vmem:[%s3971_s1 + $0x18] sm:$0xff] }
0x156c   :  { %v361_v2 = vpop.permute.xlu0 %360 }
0x156d   :  { %369 = vst.msk [vmem:[#allocation4 + $0x1f] sm:$0x1] %vm349_vm3, %v361_v2 }
0x1570   :  { %v532_v3 = vpop.permute.xlu0 %531 }
0x1571   :  { %540 = vst.msk [vmem:[#allocation4 + $0x1e] sm:$0x1] %vm349_vm3, %v532_v3  ;;  %v1822_v3 = vld [vmem:[%s3971_s1 + $0x10] sm:$0xff] }
0x1574   :  { %v703_v46 = vpop.permute.xlu0 %702 }
0x1575   :  { %711 = vst.msk [vmem:[#allocation4 + $0x1d] sm:$0x1] %vm349_vm3, %v703_v46 }
0x1578   :  { %v874_v4 = vpop.permute.xlu0 %873 }
0x1579   :  { %882 = vst.msk [vmem:[#allocation4 + $0x1c] sm:$0x1] %vm349_vm3, %v874_v4 }
0x157c   :  { %v1045_v8 = vpop.permute.xlu0 %1044 }
0x157d   :  { %1053 = vst.msk [vmem:[#allocation4 + $0x1b] sm:$0x1] %vm349_vm3, %v1045_v8 }
0x1580   :  { %v1216_v7 = vpop.permute.xlu0 %1215 }
0x1581   :  { %1224 = vst.msk [vmem:[#allocation4 + $0x1a] sm:$0x1] %vm349_vm3, %v1216_v7  ;;  %v1821_v7 = vld [vmem:[%s3971_s1 + $0x8] sm:$0xff] }
0x1584   :  { %v1387_v10 = vpop.permute.xlu0 %1386 }
0x1585   :  { %1395 = vst.msk [vmem:[#allocation4 + $0x19] sm:$0x1] %vm349_vm3, %v1387_v10 }
0x15c7   :  { %v1552_v9 = vpop.permute.xlu0 %1551  ;;  %v1536_v11 = vpop.permute.xlu1 %1535 }
0x15c8   :  { %1563 = vst.msk [vmem:[#allocation4] sm:$0x1] %vm349_vm3, %v1552_v9  ;;  %1547 = vst.msk [vmem:[#allocation3 + $0x7] sm:$0x1] %vm349_vm3, %v1536_v11  ;;  %v1820_v11 = vld [vmem:[%s3971_s1] sm:$0xff] }
0x15cb   :  { %v1554_v12 = vpop.permute.xlu0 %1553  ;;  %v1538_v13 = vpop.permute.xlu1 %1537 }
0x15cc   :  { %1564 = vst.msk [vmem:[#allocation4 + $0x8] sm:$0x1] %vm349_vm3, %v1554_v12  ;;  %1548 = vst.msk [vmem:[#allocation3 + $0xf] sm:$0x1] %vm349_vm3, %v1538_v13 }
0x15cf   :  { %v1556_v14 = vpop.permute.xlu0 %1555  ;;  %v1540_v15 = vpop.permute.xlu1 %1539  ;;  %v3796_v16 = vld [vmem:[#allocation4] sm:$0xff] }
0x15d0   :  { %v3798_v17 = vld [vmem:[#allocation3] sm:$0xff]  ;;  %1565 = vst.msk [vmem:[#allocation4 + $0x10] sm:$0x1] %vm349_vm3, %v1556_v14  ;;  %1549 = vst.msk [vmem:[#allocation3 + $0x17] sm:$0x1] %vm349_vm3, %v1540_v15  ;;  %2972 = vmatprep.mubr.msk.f32.mxu0 %vm1579_vm4, %v3796_v16 }
0x15d1   :  { %2982 = vmatprep.mubr.msk.f32.mxu1 %vm1579_vm4, %v3798_v17  ;;  %v1856_v14 = vld [vmem:[%s3972_s2] sm:$0x3] }
0x15d2   :  { %v1857_v15 = vld [vmem:[%s3973_s3] sm:$0x3] }
0x15d3   :  { %v1558_v18 = vpop.permute.xlu0 %1557  ;;  %v1542_v20 = vpop.permute.xlu1 %1541  ;;  %v3806_v28 = vld [vmem:[#allocation4 + $0x8] sm:$0xff] }
0x15d4   :  { %v3808_v21 = vld [vmem:[#allocation3 + $0x8] sm:$0xff]  ;;  %1566 = vst.msk [vmem:[#allocation4 + $0x18] sm:$0x1] %vm349_vm3, %v1558_v18  ;;  %1550 = vst.msk [vmem:[#allocation3 + $0x1f] sm:$0x1] %vm349_vm3, %v1542_v20  ;;  %2973 = vmatmul.mubr.msk.f32.vlgmr.msra.gmra.mxu0 %vm1579_vm4, %v3806_v28 }
0x15d5   :  { %2983 = vmatmul.mubr.msk.f32.vlgmr.msra.gmra.mxu1 %vm1579_vm4, %v3808_v21 }
0x15d7   :  { %v3816_v22 = vld [vmem:[#allocation4 + $0x10] sm:$0xff] }
0x15d8   :  { %v3818_v23 = vld [vmem:[#allocation3 + $0x10] sm:$0xff]  ;;  %2975 = vmatprep.mubr.msk.f32.mxu0 %vm1579_vm4, %v3816_v22 }
0x15d9   :  { %2985 = vmatprep.mubr.msk.f32.mxu1 %vm1579_vm4, %v3818_v23 }
0x15db   :  { %v3824_v24 = vld [vmem:[#allocation4 + $0x18] sm:$0xff] }
0x15dc   :  { %v3826_v25 = vld [vmem:[#allocation3 + $0x18] sm:$0xff]  ;;  %2976 = vmatmul.mubr.msk.f32.gmra.mxu0 %vm1579_vm4, %v3824_v24 }
0x15dd   :  { %2986 = vmatmul.mubr.msk.f32.gmra.mxu1 %vm1579_vm4, %v3826_v25  ;;  %2996 = vmatprep.mubr.msk.f32.mxu0 %vm3244_vm0, %v3243_v0 }
0x15de   :  { %3007 = vmatprep.mubr.msk.f32.mxu1 %vm3244_vm0, %v3243_v0 }
0x1694   :  { %v2974_v26 = vpop.f32.mrf.mxu0 }
0x1695   :  { %v2984_v29 = vpop.f32.mrf.mxu1 }
0x1696   :  { %v1658_v30 = vpop.f32.mrf.mxu0  ;;  %v1761_v33 = vadd.f32 %v2984_v29, %v2974_v26 }
0x1697   :  { %v1755_v31 = vpop.f32.mrf.mxu1 }
0x1698   :  { %v1756_v32 = vadd.f32 %v1755_v31, %v1658_v30  ;;  %v1782_v41 = vadd.f32 %v2736_v34, %v1761_v33 }
0x169a   :  { %v1781_v35 = vadd.f32 %v2736_v34, %v1756_v32 }
0x169c   :  { %v2977_v37 = vpop.f32.mrf.mxu0  ;;  %3149 = vtanh.f32 %v1781_v35 }
0x169d   :  { %v2987_v39 = vpop.f32.mrf.mxu1 }
0x169e   :  { %v1771_v40 = vadd.f32 %v2987_v39, %v2977_v37  ;;  %v1668_v42 = vpop.f32.mrf.mxu0  ;;  %v2303_v37 = vld [vmem:[%s3981_s11 + $0x18] sm:$0xff]  ;;  %v2301_v39 = vld [vmem:[%s3981_s11 + $0x8] sm:$0xff] }
0x169f   :  { %v1765_v43 = vpop.f32.mrf.mxu1 }
0x16a0   :  { %v1784_v45 = vadd.f32 %v2736_v34, %v1771_v40  ;;  %v1766_v48 = vadd.f32 %v1765_v43, %v1668_v42  ;;  %v2302_v40 = vld [vmem:[%s3981_s11 + $0x10] sm:$0xff] }
0x16a2   :  { %3151 = vtanh.f32 %v1784_v45  ;;  %v1783_v49 = vadd.f32 %v2736_v34, %v1766_v48 }
0x16a3   :  { %3153 = vtanh.f32 %v1782_v41  ;;  %v2300_v41 = vld [vmem:[%s3981_s11] sm:$0xff] }
0x16a4   :  { %3155 = vtanh.f32 %v1783_v49 }
0x16a9   :  { %v3150_v51 = vpop.eup %3149 }
0x16aa   :  { %v1796_v50 = vmul.f32 %v3150_v51, %v2737_v56 }
0x16ac   :  { %v1800_v52 = vsel %vm199_vm2, %v1796_v50, 0.0  ;;  %v2304_v50 = vld [vmem:[%s3981_s11 + $0x20] sm:$0xff] }
0x16af   :  { %v3152_v36 = vpop.eup %3151 }
0x16b0   :  { %v3154_v53 = vpop.eup %3153  ;;  %v1799_v54 = vmul.f32 %v3152_v36, %v2737_v56 }
0x16b1   :  { %v3156_v55 = vpop.eup %3155  ;;  %v1797_v27 = vmul.f32 %v3154_v53, %v2737_v56 }
0x16b2   :  { %v1809_v47 = vsel %vm199_vm2, %v1799_v54, 0.0  ;;  %v1798_v38 = vmul.f32 %v3156_v55, %v2737_v56  ;;  %v2305_v54 = vld [vmem:[%s3981_s11 + $0x28] sm:$0xff]  ;;  %v2307_v55 = vld [vmem:[%s3981_s11 + $0x38] sm:$0xff] }
0x16b3   :  { %1810 = vadd.xlane.f32.xlu1 %v1809_v47  ;;  %v1803_v57 = vsel %vm199_vm2, %v1797_v27, 0.0 }
0x16b4   :  { %v1806_v59 = vsel %vm199_vm2, %v1798_v38, 0.0 }
0x16b5   :  { %1807 = vadd.xlane.f32.xlu0 %v1806_v59 }
0x16b7   :  { %1801 = vadd.xlane.f32.xlu1 %v1800_v52  ;;  %v2306_v52 = vld [vmem:[%s3981_s11 + $0x30] sm:$0xff] }
0x16b9   :  { %1804 = vadd.xlane.f32.xlu0 %v1803_v57 }
0x173c   :  { %v1811_v61 = vpop.xlane.xlu1 %1810 }
0x173d   :  { %v1818_v58 = vmul.f32 1.442695, %v1811_v61 }
0x173e   :  { %v1808_v44 = vpop.xlane.xlu0 %1807 }
0x173f   :  { %3157 = vpow2.f32 %v1818_v58  ;;  %v1816_v62 = vmul.f32 1.442695, %v1808_v44  ;;  %v2308_v58 = vld [vmem:[%s3981_s11 + $0x40] sm:$0xff] }
0x1740   :  { %v1802_v60 = vpop.xlane.xlu1 %1801  ;;  %v2603_v44 = vld [vmem:[%s3974_s4] sm:$0x3]  ;;  %s3250_s4 = smov [#allocation10]  }
0x1741   :  { %3159 = vpow2.f32 %v1816_v62  ;;  %v1812_v63 = vmul.f32 1.442695, %v1802_v60  ;;  %s2706_s16 = sshll.u32 %s3250_s4, 4  ;;  %s2707_s16 = int_to_ptr.vmem [resolvable:$true] %s2706_s16 }
0x1742   :  { %v1805_v5 = vpop.xlane.xlu0 %1804  ;;  %p3218_p11 = scmp.lt.s32.totalorder %s2707_s16, %s2707_s16 }
0x1743   :  { %v1814_v1 = vmul.f32 1.442695, %v1805_v5  ;;  %3161 = vpow2.f32 %v1812_v63 }
0x1745   :  { %3163 = vpow2.f32 %v1814_v1 }
0x174c   :  { %v3158_v2 = vpop.eup %3157 }
0x174d   :  { %v1827_v46 = vmul.f32 %v3158_v2, %v1823_v6 }
0x174e   :  { %v3160_v4 = vpop.eup %3159 }
0x174f   :  { %2989 = vmatpush3.msra.mxu0 %v1827_v46  ;;  %3000 = vmatpush3.msra.mxu1 %v1827_v46  ;;  %v1826_v8 = vmul.f32 %v3160_v4, %v1822_v3 }
0x1750   :  { %1845 = vperm.xlu0 %3099, %v1827_v46   ;;  %2990 = vmatprep.subr.mxu0 %v3243_v0  ;;  %v3162_v10 = vpop.eup %3161 }
0x1751   :  { %3001 = vmatprep.subr.mxu1 %v3243_v0  ;;  %2991 = vmatpush3.msra.mxu0 %v1826_v8  ;;  %v1824_v13 = vmul.f32 %v3162_v10, %v1820_v11 }
0x1752   :  { %v3164_v9 = vpop.eup %3163  ;;  %3002 = vmatpush3.msra.mxu1 %v1826_v8  ;;  %2992 = vmatprep.subr.mxu0 %v3243_v0 }
0x1753   :  { %3003 = vmatprep.subr.mxu1 %v3243_v0  ;;  %v1825_v12 = vmul.f32 %v3164_v9, %v1821_v7 }
0x1755   :  { %1835 = vperm.xlu1 %3100, %v1825_v12   ;;  %2993 = vmatpush3.msra.mxu0 %v1825_v12 }
0x1756   :  { %3004 = vmatpush3.msra.mxu1 %v1825_v12  ;;  %2994 = vmatprep.subr.mxu0 %v3243_v0 }
0x1757   :  { %3005 = vmatprep.subr.mxu1 %v3243_v0  ;;  %2995 = vmatpush3.msra.mxu0 %v1824_v13 }
0x1758   :  { %3006 = vmatpush3.msra.mxu1 %v1824_v13  ;;  %2997 = vmatmul.mubr.msk.f32.vlgmr.msra.gmra.mxu0 %vm199_vm2, %v1856_v14 }
0x1759   :  { %1840 = vperm.xlu1 %3100, %v1826_v8   ;;  %3008 = vmatmul.mubr.msk.f32.vlgmr.msra.gmra.mxu1 %vm199_vm2, %v1857_v15 }
0x175a   :  { %3010 = vmatprep.subr.mxu0 %v3243_v0  ;;  %3021 = vmatprep.subr.mxu1 %v3243_v0 }
0x175b   :  { %3018 = vmatprep.mubr.msk.f32.mxu0 %vm3244_vm0, %v3243_v0  ;;  %3029 = vmatprep.mubr.msk.f32.mxu1 %vm3244_vm0, %v3243_v0 }
0x175d   :  { %1830 = vperm.xlu1 %3100, %v1824_v13  }
0x17cb   :  { %v1846_v18 = vpop.permute.xlu0 %1845 }
0x17cc   :  { %v1851_v20 = vmul.f32 %v1846_v18, %v3826_v25  ;;  %v1855_v26 = vmul.f32 %v1846_v18, %v3824_v24 }
0x17ce   :  { %3011 = vmatpush3.msra.mxu0 %v1851_v20  ;;  %3022 = vmatpush3.msra.mxu1 %v1855_v26 }
0x17cf   :  { %3012 = vmatprep.subr.mxu0 %v3243_v0  ;;  %3023 = vmatprep.subr.mxu1 %v3243_v0 }
0x17d0   :  { %v1836_v29 = vpop.permute.xlu1 %1835 }
0x17d1   :  { %v1849_v33 = vmul.f32 %v1836_v29, %v3808_v21  ;;  %v1853_v34 = vmul.f32 %v1836_v29, %v3806_v28 }
0x17d4   :  { %v1841_v30 = vpop.permute.xlu1 %1840 }
0x17d5   :  { %v1850_v31 = vmul.f32 %v1841_v30, %v3818_v23  ;;  %v1854_v32 = vmul.f32 %v1841_v30, %v3816_v22 }
0x17d7   :  { %3013 = vmatpush3.msra.mxu0 %v1850_v31  ;;  %3024 = vmatpush3.msra.mxu1 %v1854_v32 }
0x17d8   :  { %v1831_v25 = vpop.permute.xlu1 %1830  ;;  %3014 = vmatprep.subr.mxu0 %v3243_v0  ;;  %3025 = vmatprep.subr.mxu1 %v3243_v0 }
0x17d9   :  { %v1848_v24 = vmul.f32 %v1831_v25, %v3798_v17  ;;  %v1852_v35 = vmul.f32 %v1831_v25, %v3796_v16  ;;  %3015 = vmatpush3.msra.mxu0 %v1849_v33  ;;  %3026 = vmatpush3.msra.mxu1 %v1853_v34 }
0x17da   :  { %3016 = vmatprep.subr.mxu0 %v3243_v0  ;;  %3027 = vmatprep.subr.mxu1 %v3243_v0 }
0x17db   :  { %3017 = vmatpush3.msra.mxu0 %v1848_v24  ;;  %3028 = vmatpush3.msra.mxu1 %v1852_v35 }
0x17dc   :  { %3032 = vmatprep.subr.mxu0 %v3243_v0  ;;  %3043 = vmatprep.subr.mxu1 %v3243_v0 }
0x17dd   :  { %3019 = vmatmul.mubr.msk.f32.vlgmr.msra.gmra.mxu0 %vm199_vm2, %v1856_v14  ;;  %3030 = vmatmul.mubr.msk.f32.vlgmr.msra.gmra.mxu1 %vm199_vm2, %v1856_v14 }
0x17de   :  { %3033 = vmatpush3.msra.mxu0 %v1851_v20  ;;  %3044 = vmatpush3.msra.mxu1 %v1855_v26 }
0x17df   :  { %3034 = vmatprep.subr.mxu0 %v3243_v0  ;;  %3045 = vmatprep.subr.mxu1 %v3243_v0 }
0x17e0   :  { %3035 = vmatpush3.msra.mxu0 %v1850_v31  ;;  %3046 = vmatpush3.msra.mxu1 %v1854_v32 }
0x17e1   :  { %3036 = vmatprep.subr.mxu0 %v3243_v0  ;;  %3047 = vmatprep.subr.mxu1 %v3243_v0 }
0x17e2   :  { %3037 = vmatpush3.msra.mxu0 %v1849_v33  ;;  %3048 = vmatpush3.msra.mxu1 %v1853_v34 }
0x17e3   :  { %3038 = vmatprep.subr.mxu0 %v3243_v0  ;;  %3049 = vmatprep.subr.mxu1 %v3243_v0 }
0x17e4   :  { %3039 = vmatpush3.msra.mxu0 %v1848_v24  ;;  %3050 = vmatpush3.msra.mxu1 %v1852_v35 }
0x17e5   :  { %3040 = vmatprep.mubr.msk.f32.mxu0 %vm3244_vm0, %v3243_v0  ;;  %3051 = vmatprep.mubr.msk.f32.mxu1 %vm3244_vm0, %v3243_v0 }
0x17e6   :  { %3041 = vmatmul.mubr.msk.f32.vlgmr.msra.gmra.mxu0 %vm199_vm2, %v1857_v15  ;;  %3052 = vmatmul.mubr.msk.f32.vlgmr.msra.gmra.mxu1 %vm199_vm2, %v1857_v15 }
0x17e7   :  { %3054 = vmatprep.subr.mxu0 %v3243_v0  ;;  %3061 = vmatprep.subr.mxu1 %v3243_v0 }
0x17e8   :  { %3058 = vmatprep.mubr.msk.f32.mxu0 %vm3244_vm0, %v3243_v0  ;;  %3065 = vmatprep.mubr.msk.f32.mxu1 %vm3244_vm0, %v3243_v0 }
0x17e9   :  { %3055 = vmatpush3.msra.mxu0 %v2303_v37  ;;  %3062 = vmatpush3.msra.mxu1 %v2301_v39 }
0x17ea   :  { %3056 = vmatprep.subr.mxu0 %v3243_v0  ;;  %3063 = vmatprep.subr.mxu1 %v3243_v0 }
0x17eb   :  { %3057 = vmatpush3.msra.mxu0 %v2302_v40  ;;  %3064 = vmatpush3.msra.mxu1 %v2300_v41 }
0x17ec   :  { %3068 = vmatprep.subr.mxu0 %v3243_v0  ;;  %3075 = vmatprep.subr.mxu1 %v3243_v0 }
0x1818   :  { %v1927_v16 = vpop.f32.mrf.mxu0 }
0x1819   :  { %v1928_v17 = vadd.f32 1e-09, %v1927_v16  ;;  %v2001_v28 = vpop.f32.mrf.mxu1 }
0x181a   :  { %v2998_v21 = vpop.f32.mrf.mxu0  ;;  %v2002_v22 = vadd.f32 1e-09, %v2001_v28 }
0x181b   :  { %3165 = vrcp.f32 %v1928_v17  ;;  %v3009_v23 = vpop.f32.mrf.mxu1 }
0x181c   :  { %3167 = vrcp.f32 %v2002_v22 }
0x1828   :  { %v3166_v42 = vpop.eup %3165 }
0x1829   :  { %2078 = vperm.xlu1 %3100, %v3166_v42   ;;  %v3168_v43 = vpop.eup %3167 }
0x182d   :  { %2225 = vperm.xlu1 %3100, %v3168_v43  }
0x189d   :  { %v2072_v45 = vpop.f32.mrf.mxu0  ;;  %v2148_v48 = vpop.f32.mrf.mxu1 }
0x189f   :  { %v3020_v49 = vpop.f32.mrf.mxu0  ;;  %v3031_v51 = vpop.f32.mrf.mxu1 }
0x18a4   :  { %v2079_v36 = vpop.permute.xlu1 %2078 }
0x18a5   :  { %v2081_v56 = vmul.f32 %v2079_v36, %v2072_v45  ;;  %v2152_v53 = vmul.f32 %v2148_v48, %v2079_v36 }
0x18a6   :  { %v2219_v47 = vpop.f32.mrf.mxu0  ;;  %v2295_v38 = vpop.f32.mrf.mxu1 }
0x18a7   :  { %3059 = vmatmul.mubr.msk.f32.vlgmr.msra.gmra.mxu0 %vm1579_vm4, %v2152_v53  ;;  %3066 = vmatmul.mubr.msk.f32.vlgmr.msra.gmra.mxu1 %vm1579_vm4, %v2081_v56 }
0x18a8   :  { %v2226_v59 = vpop.permute.xlu1 %2225  ;;  %3069 = vmatpush3.msra.mxu0 %v2305_v54  ;;  %3076 = vmatpush3.msra.mxu1 %v2307_v55  ;;  %v3042_v27 = vpop.f32.mrf.mxu0 }
0x18a9   :  { %v2228_v57 = vmul.f32 %v2226_v59, %v2219_v47  ;;  %v2299_v19 = vmul.f32 %v2295_v38, %v2226_v59  ;;  %3070 = vmatprep.subr.mxu0 %v3243_v0  ;;  %3077 = vmatprep.subr.mxu1 %v3243_v0  ;;  %v3053_v61 = vpop.f32.mrf.mxu1 }
0x18aa   :  { %3071 = vmatpush3.msra.mxu0 %v2304_v50  ;;  %3072 = vmatprep.mubr.msk.f32.mxu0 %vm3244_vm0, %v3243_v0 }
0x18ab   :  { %3078 = vmatpush3.msra.mxu1 %v2306_v52  ;;  %3079 = vmatprep.mubr.msk.f32.mxu1 %vm3244_vm0, %v3243_v0 }
0x18ac   :  { %3073 = vmatmul.mubr.msk.f32.vlgmr.msra.gmra.mxu0 %vm1579_vm4, %v2228_v57  ;;  %3080 = vmatmul.mubr.msk.f32.vlgmr.msra.gmra.mxu1 %vm1579_vm4, %v2299_v19 }
0x18ad   :  { %3082 = vmatprep.subr.mxu0 %v3243_v0  ;;  %3084 = vmatprep.mubr.msk.f32.mxu0 %vm3244_vm0, %v3243_v0  ;;  %v2749_v0 = vld [vmem:[%s3982_s12] ss:$0 sm:$0xff]  ;;  %s3213_s12 = scalar_lea.vmem %s2707_s16, 32 }
0x18ae   :  { %3083 = vmatpush3.msra.mxu0 %v2308_v58  ;;  %p3214_p10 = scmp.ne.s32.totalorder %s2707_s16, %s3213_s12  ;;  %p3219_p12 = scmp.lt.s32.totalorder %s3213_s12, %s3213_s12 }
0x18b0   :  { %3085 = vmatmul.mubr.msk.f32.vlgmr.msra.gmra.mxu0 %vm2604_vm5, %v2603_v44  ;;  %p3220_p13 = por %p3219_p12, %p3218_p11 }
0x18b2   :  { %p3221_p0 = pnand %p3220_p13, %p3214_p10 }
0x1967   :  { %v2378_v62 = vpop.f32.mrf.mxu0  ;;  %v2451_v60 = vpop.f32.mrf.mxu1 }
0x1968   :  { %v2452_v1 = vadd.f32 %v2451_v60, %v2378_v62 }
0x1969   :  { %v3060_v63 = vpop.f32.mrf.mxu0  ;;  %v3067_v5 = vpop.f32.mrf.mxu1 }
0x196c   :  { %v2524_v6 = vpop.f32.mrf.mxu0  ;;  %v2598_v2 = vpop.f32.mrf.mxu1 }
0x196d   :  { %v2528_v3 = vadd.f32 %v2524_v6, %v2452_v1 }
0x196e   :  { %v3074_v46 = vpop.f32.mrf.mxu0  ;;  %v3081_v4 = vpop.f32.mrf.mxu1 }
0x196f   :  { %v2602_v8 = vadd.f32 %v2598_v2, %v2528_v3 }
0x1970   :  { %v2674_v7 = vpop.f32.mrf.mxu0 }
0x1971   :  { %v2678_v10 = vadd.f32 %v2674_v7, %v2602_v8 }
0x1972   :  { %v3086_v9 = vpop.f32.mrf.mxu0 }
0x1973   :  { %v2686_v11 = vadd.f32 %v2749_v0, %v2678_v10 }
0x1975   :  { %v2688_v12 = vsel %vm2687_vm6, %v2686_v11, -inf }
0x1976   :  { %2689 = vmax.xlane.f32.xlu1 %v2688_v12 }
0x19ff   :  { %v2690_v13 = vpop.xlane.xlu1 %2689 }
0x1a00   :  { %v2691_v14 = vsub.f32 %v2686_v11, %v2690_v13 }
0x1a02   :  { %v2692_v15 = vmul.f32 1.442695, %v2691_v14 }
0x1a04   :  { %3169 = vpow2.f32 %v2692_v15 }
0x1a11   :  { %v3170_v18 = vpop.eup %3169 }
0x1a12   :  { %v2694_v20 = vsel %vm2687_vm6, %v3170_v18, 0.0 }
0x1a13   :  { %2695 = vadd.xlane.f32.xlu0 %v2694_v20 }
0x1a9c   :  { %v2696_v26 = vpop.xlane.xlu0 %2695 }
0x1a9d   :  { %3171 = vrcp.f32 %v2696_v26 }
0x1aaa   :  { %v3172_v29 = vpop.eup %3171 }
0x1aab   :  { %v2698_v30 = vmul.f32 %v3172_v29, %v3170_v18 }
0x1aad   :  { %2699 = vst.msk [vmem:[#allocation10] sm:$0x3] %vm2687_vm6, %v2698_v30 }
0x1aae   :  { %3224 = shalt.err (!%p3221_p0)
}
0x1aaf   :  { %2709 = dma.vmem_to_hbm [thread:$0]  %s2707_s16, 32, %s3983_s13, [#allocation7]  }
0x1ab0   :  { %3237 = dma.done.wait [#allocation7], 32  }
0x1ab1   :  { %3238 = vsyncadd [#allocation7], 4294967264 }
0x1ab2   :  { %2713 = vsyncpa [#allocation6], 1 }
0x1ab3   :  { %2714 = vsyncpa [#allocation9], 1 }
0x1ab4   :  { %2715 = vsyncpa [#allocation7], 1 }

</bundles_post_ra>
